<compile_context>
chip_gen: v7x
topology: tpu7x:2x2x1
jax: 0.10.0
libtpu: 0.0.40
codegen_flags: <defaults>
</compile_context>

<pallas_src>
import numpy as np
import jax
import jax.numpy as jnp
from jax.experimental import pallas as pl
from jax.experimental.pallas import tpu as pltpu


# ----------------------------- kernel 1 ------------------------------------
def make_dist_kernel(offsets, radius, h_dis, w_dis, ksize, stride, dilation,
                     h_out, w_out):
    n_off = len(offsets)

    def dist_kernel(xpad_ref, dist_ref, dsum_ref):
        # Slice the Ref (zero-cost views -> offset vector loads).
        base = xpad_ref[0, :, radius:radius + h_dis, radius:radius + w_dis]
        chunks = []
        for (di, dj) in offsets:  # static python ints -> static slices
            shifted = xpad_ref[0, :, radius + di:radius + di + h_dis,
                                     radius + dj:radius + dj + w_dis]
            diff = base - shifted
            # squared L2 distance per pixel, summed over input channels
            chunks.append(jnp.sum(diff * diff, axis=0))     # (h_dis, w_dis)
        dsq = jnp.stack(chunks, axis=0)                      # (9, h_dis, w_dis)

        # all-ones depthwise conv == box sum; separable row pass + column pass
        if stride == 1:
            row = dsq[:, :, 0:w_out]
            for b in range(1, ksize):
                bj = b * dilation
                row = row + dsq[:, :, bj:bj + w_out]         # (9, h_dis, w_out)
            acc = row[:, 0:h_out, :]
            for a in range(1, ksize):
                ai = a * dilation
                acc = acc + row[:, ai:ai + h_out, :]         # (9, h_out, w_out)
        else:
            def wslice(b):
                bj = b * dilation
                return jax.lax.slice(
                    dsq, (0, 0, bj),
                    (n_off, h_dis, bj + (w_out - 1) * stride + 1),
                    (1, 1, stride))
            row = wslice(0)
            for b in range(1, ksize):
                row = row + wslice(b)                        # (9, h_dis, w_out)

            def hslice(a):
                ai = a * dilation
                return jax.lax.slice(
                    row, (0, ai, 0),
                    (n_off, ai + (h_out - 1) * stride + 1, w_out),
                    (1, stride, 1))
            acc = hslice(0)
            for a in range(1, ksize):
                acc = acc + hslice(a)                        # (9, h_out, w_out)

        dist_ref[0] = acc

        # per-batch scalar sum (lane, sublane, then leading-dim reductions)
        bsum = jnp.sum(acc, axis=2, keepdims=True)           # (9, h_out, 1)
        bsum = jnp.sum(bsum, axis=1, keepdims=True)          # (9, 1, 1)
        bsum = jnp.sum(bsum, axis=0, keepdims=True)          # (1, 1, 1)
        dsum_ref[...] = bsum

    return dist_kernel


# ----------------------------- kernel 2 ------------------------------------
def make_prob_kernel(patch_sampling_num, temperature):
    inv_t = 1.0 / temperature

    def prob_kernel(scale_ref, dist_ref, prob_ref):
        d = dist_ref[0]                                      # (9, h*w) lane-dense
        # scale = -1/(2*bw^2*mean) precomputed in glue -> no in-kernel divides
        e = jnp.exp(d * scale_ref[0])
        # all-ones 1x1 conv (9 -> outdim) is a channel sum; identical for every
        # out-channel so a single map is kept.  The /patch_sampling_num factor
        # cancels in the normalization but is kept to mirror the reference.
        s = jnp.sum(e, axis=0, keepdims=True) * (1.0 / patch_sampling_num)
        if inv_t == 2.0:                                     # temperature = 0.5
            p = s * s
        else:
            p = s ** inv_t
        denom = jnp.sum(p, axis=1, keepdims=True)            # (1, 1)
        prob_ref[0] = p * pl.reciprocal(denom, approx=True)  # EUP, not VPU divide

    return prob_kernel


# ----------------------------- wrapper -------------------------------------
def info_dropout_forward(x_old, x, key, *, indim, outdim, kernel_size,
                         stride=1, padding=0, dilation=1,
                         drop_rate=0.1, temperature=0.5, band_width=1.0,
                         radius=3, patch_sampling_num=9, offset_seed=0):
    N, C_in, H, W = x_old.shape
    assert C_in == indim
    Nb, C, h, w = x.shape
    assert Nb == N and C == outdim

    # deterministic host-side random patch offsets (torch.randint equivalent)
    rng = np.random.default_rng(offset_seed)
    sampled_i = [int(v) for v in rng.integers(-radius, radius + 1,
                                              size=patch_sampling_num)]
    sampled_j = [int(v) for v in rng.integers(-radius, radius + 1,
                                              size=patch_sampling_num)]
    offsets = list(zip(sampled_i, sampled_j))

    # ConstantPad2d((p+r, p+r+1, p+r, p+r+1), 0)
    pad_lo = padding + radius
    pad_hi = padding + radius + 1
    xpad = jnp.pad(x_old.astype(jnp.float32),
                   ((0, 0), (0, 0), (pad_lo, pad_hi), (pad_lo, pad_hi)))
    Hp, Wp = xpad.shape[2], xpad.shape[3]

    h_dis = H + 2 * padding
    w_dis = W + 2 * padding
    h_out = (h_dis - dilation * (kernel_size - 1) - 1) // stride + 1
    w_out = (w_dis - dilation * (kernel_size - 1) - 1) // stride + 1
    assert (h_out, w_out) == (h, w), "x spatial shape must match conv output"
    hw = h_out * w_out

    # --- kernel 1: distance map + per-batch scalar sums ---
    dist, dsum = pl.pallas_call(
        make_dist_kernel(offsets, radius, h_dis, w_dis, kernel_size, stride,
                         dilation, h_out, w_out),
        out_shape=(
            jax.ShapeDtypeStruct((N, patch_sampling_num, h_out, w_out),
                                 jnp.float32),
            jax.ShapeDtypeStruct((N, 1, 1), jnp.float32),
        ),
        grid=(N,),
        in_specs=[pl.BlockSpec((1, indim, Hp, Wp), lambda b: (b, 0, 0, 0))],
        out_specs=(
            pl.BlockSpec((1, patch_sampling_num, h_out, w_out),
                         lambda b: (b, 0, 0, 0)),
            pl.BlockSpec((1, 1, 1), lambda b: (b, 0, 0)),
        ),
        compiler_params=pltpu.CompilerParams(
            dimension_semantics=("parallel",)),
    )(xpad)

    # --- global mean from N scalars; fold constant scalar math into one scale ---
    mean = jnp.sum(dsum) / float(N * patch_sampling_num * h_out * w_out)
    mean = jnp.maximum(mean, 1e-12)  # guard (reference would NaN on constant input)
    scale = (-1.0 / (2.0 * band_width ** 2)) / mean
    scale_arr = scale.reshape((1,)).astype(jnp.float32)

    # lane-dense layout for kernel 2: h*w (=256) becomes the 128-wide lane dim
    dist_flat = dist.reshape(N, patch_sampling_num, hw)

    # --- kernel 2: sampling probability map (shared across out-channels) ---
    prob = pl.pallas_call(
        make_prob_kernel(patch_sampling_num, temperature),
        out_shape=jax.ShapeDtypeStruct((N, 1, hw), jnp.float32),
        grid=(N,),
        in_specs=[
            pl.BlockSpec(memory_space=pltpu.MemorySpace.SMEM),
            pl.BlockSpec((1, patch_sampling_num, hw), lambda b: (b, 0, 0)),
        ],
        out_specs=pl.BlockSpec((1, 1, hw), lambda b: (b, 0, 0)),
        compiler_params=pltpu.CompilerParams(
            dimension_semantics=("parallel",)),
    )(scale_arr, dist_flat)
    prob = prob.reshape(N, hw)

    # --- multinomial drop-position sampling (replacement=True, matching the
    #     reference random_sample), mask build, and apply: plain XLA glue ---
    sampling_num = int(drop_rate * h * w)
    logits = jnp.log(prob + 1e-8)                                   # (N, h*w)
    logits = jnp.broadcast_to(logits[:, None, :], (N, C, hw)).reshape(N * C, hw)
    choices = jax.random.categorical(
        key, logits, axis=-1, shape=(sampling_num, N * C)).T        # (N*C, S)
    mask = jnp.ones((N * C, hw), jnp.float32)
    mask = mask.at[jnp.arange(N * C)[:, None], choices].set(0.0)
    mask = mask.reshape(N, C, h, w).astype(x.dtype)

    return x * mask


# ------------------------------ demo ---------------------------------------
if __name__ == "__main__":
    # Module config: Info_Dropout(indim=4, outdim=8, kernel_size=3,
    #                             stride=1, padding=1, if_pool=False)
    indim, outdim = 4, 8
    kernel_size, stride, padding, dilation = 3, 1, 1, 1
    N, H, W = 2, 16, 16

    key = jax.random.PRNGKey(0)
    k_old, k_x, k_samp = jax.random.split(key, 3)

    x_old = jax.random.normal(k_old, (N, indim, H, W), dtype=jnp.float32)
    # x is the (post-conv) feature map the dropout mask is applied to:
    # with k=3, s=1, p=1 its spatial size equals H, W.
    x = jax.random.normal(k_x, (N, outdim, H, W), dtype=jnp.float32)

    out = info_dropout_forward(
        x_old, x, k_samp,
        indim=indim, outdim=outdim, kernel_size=kernel_size,
        stride=stride, padding=padding, dilation=dilation)

    out = jax.block_until_ready(out)
    assert out.shape == x.shape and bool(jnp.all(jnp.isfinite(out)))
    print("KERNEL_OK")
</pallas_src>

<mosaic_0001>
module attributes {stable_mosaic.version = 11 : i64} {
  func.func @dist_kernel(%arg0: i32, %arg1: memref<1x4x25x25xf32, #tpu.memory_space<vmem>>, %arg2: memref<1x9x16x16xf32, #tpu.memory_space<vmem>>, %arg3: memref<1x1x1xf32, #tpu.memory_space<vmem>>) attributes {dimension_semantics = [#tpu.dimension_semantics<parallel>], iteration_bounds = array<i64: 2>, scalar_prefetch = 0 : i64, scratch_operands = 0 : i64, tpu.core_type = #tpu.core_type<tc>, window_params = [{transform_indices = @transform_0, window_bounds = array<i64: 1, 4, 25, 25>}, {transform_indices = @transform_1, window_bounds = array<i64: 1, 9, 16, 16>}, {transform_indices = @transform_2, window_bounds = array<i64: 1, 1, 1>}]} {
    %c0 = arith.constant 0 : index
    %c0_0 = arith.constant 0 : index
    %c3 = arith.constant 3 : index
    %c3_1 = arith.constant 3 : index
    %0 = vector.load %arg1[%c0, %c0_0, %c3, %c3_1] : memref<1x4x25x25xf32, #tpu.memory_space<vmem>>, vector<1x4x18x18xf32>
    %1 = vector.shape_cast %0 : vector<1x4x18x18xf32> to vector<4x18x18xf32>
    %c0_2 = arith.constant 0 : index
    %c0_3 = arith.constant 0 : index
    %c5 = arith.constant 5 : index
    %c5_4 = arith.constant 5 : index
    %2 = vector.load %arg1[%c0_2, %c0_3, %c5, %c5_4] : memref<1x4x25x25xf32, #tpu.memory_space<vmem>>, vector<1x4x18x18xf32>
    %3 = vector.shape_cast %2 : vector<1x4x18x18xf32> to vector<4x18x18xf32>
    %4 = arith.subf %1, %3 : vector<4x18x18xf32>
    %5 = arith.mulf %4, %4 : vector<4x18x18xf32>
    %cst = arith.constant dense<0.000000e+00> : vector<18x18xf32>
    %6 = vector.multi_reduction <add>, %5, %cst [0] : vector<4x18x18xf32> to vector<18x18xf32>
    %c0_5 = arith.constant 0 : index
    %c0_6 = arith.constant 0 : index
    %c4 = arith.constant 4 : index
    %c4_7 = arith.constant 4 : index
    %7 = vector.load %arg1[%c0_5, %c0_6, %c4, %c4_7] : memref<1x4x25x25xf32, #tpu.memory_space<vmem>>, vector<1x4x18x18xf32>
    %8 = vector.shape_cast %7 : vector<1x4x18x18xf32> to vector<4x18x18xf32>
    %9 = arith.subf %1, %8 : vector<4x18x18xf32>
    %10 = arith.mulf %9, %9 : vector<4x18x18xf32>
    %cst_8 = arith.constant dense<0.000000e+00> : vector<18x18xf32>
    %11 = vector.multi_reduction <add>, %10, %cst_8 [0] : vector<4x18x18xf32> to vector<18x18xf32>
    %c0_9 = arith.constant 0 : index
    %c0_10 = arith.constant 0 : index
    %c3_11 = arith.constant 3 : index
    %c6 = arith.constant 6 : index
    %12 = vector.load %arg1[%c0_9, %c0_10, %c3_11, %c6] : memref<1x4x25x25xf32, #tpu.memory_space<vmem>>, vector<1x4x18x18xf32>
    %13 = vector.shape_cast %12 : vector<1x4x18x18xf32> to vector<4x18x18xf32>
    %14 = arith.subf %1, %13 : vector<4x18x18xf32>
    %15 = arith.mulf %14, %14 : vector<4x18x18xf32>
    %cst_12 = arith.constant dense<0.000000e+00> : vector<18x18xf32>
    %16 = vector.multi_reduction <add>, %15, %cst_12 [0] : vector<4x18x18xf32> to vector<18x18xf32>
    %c0_13 = arith.constant 0 : index
    %c0_14 = arith.constant 0 : index
    %c1 = arith.constant 1 : index
    %c3_15 = arith.constant 3 : index
    %17 = vector.load %arg1[%c0_13, %c0_14, %c1, %c3_15] : memref<1x4x25x25xf32, #tpu.memory_space<vmem>>, vector<1x4x18x18xf32>
    %18 = vector.shape_cast %17 : vector<1x4x18x18xf32> to vector<4x18x18xf32>
    %19 = arith.subf %1, %18 : vector<4x18x18xf32>
    %20 = arith.mulf %19, %19 : vector<4x18x18xf32>
    %cst_16 = arith.constant dense<0.000000e+00> : vector<18x18xf32>
    %21 = vector.multi_reduction <add>, %20, %cst_16 [0] : vector<4x18x18xf32> to vector<18x18xf32>
    %c0_17 = arith.constant 0 : index
    %c0_18 = arith.constant 0 : index
    %c2 = arith.constant 2 : index
    %c4_19 = arith.constant 4 : index
    %22 = vector.load %arg1[%c0_17, %c0_18, %c2, %c4_19] : memref<1x4x25x25xf32, #tpu.memory_space<vmem>>, vector<1x4x18x18xf32>
    %23 = vector.shape_cast %22 : vector<1x4x18x18xf32> to vector<4x18x18xf32>
    %24 = arith.subf %1, %23 : vector<4x18x18xf32>
    %25 = arith.mulf %24, %24 : vector<4x18x18xf32>
    %cst_20 = arith.constant dense<0.000000e+00> : vector<18x18xf32>
    %26 = vector.multi_reduction <add>, %25, %cst_20 [0] : vector<4x18x18xf32> to vector<18x18xf32>
    %c0_21 = arith.constant 0 : index
    %c0_22 = arith.constant 0 : index
    %c0_23 = arith.constant 0 : index
    %c6_24 = arith.constant 6 : index
    %27 = vector.load %arg1[%c0_21, %c0_22, %c0_23, %c6_24] : memref<1x4x25x25xf32, #tpu.memory_space<vmem>>, vector<1x4x18x18xf32>
    %28 = vector.shape_cast %27 : vector<1x4x18x18xf32> to vector<4x18x18xf32>
    %29 = arith.subf %1, %28 : vector<4x18x18xf32>
    %30 = arith.mulf %29, %29 : vector<4x18x18xf32>
    %cst_25 = arith.constant dense<0.000000e+00> : vector<18x18xf32>
    %31 = vector.multi_reduction <add>, %30, %cst_25 [0] : vector<4x18x18xf32> to vector<18x18xf32>
    %c0_26 = arith.constant 0 : index
    %c0_27 = arith.constant 0 : index
    %c0_28 = arith.constant 0 : index
    %c5_29 = arith.constant 5 : index
    %32 = vector.load %arg1[%c0_26, %c0_27, %c0_28, %c5_29] : memref<1x4x25x25xf32, #tpu.memory_space<vmem>>, vector<1x4x18x18xf32>
    %33 = vector.shape_cast %32 : vector<1x4x18x18xf32> to vector<4x18x18xf32>
    %34 = arith.subf %1, %33 : vector<4x18x18xf32>
    %35 = arith.mulf %34, %34 : vector<4x18x18xf32>
    %cst_30 = arith.constant dense<0.000000e+00> : vector<18x18xf32>
    %36 = vector.multi_reduction <add>, %35, %cst_30 [0] : vector<4x18x18xf32> to vector<18x18xf32>
    %c0_31 = arith.constant 0 : index
    %c0_32 = arith.constant 0 : index
    %c0_33 = arith.constant 0 : index
    %c4_34 = arith.constant 4 : index
    %37 = vector.load %arg1[%c0_31, %c0_32, %c0_33, %c4_34] : memref<1x4x25x25xf32, #tpu.memory_space<vmem>>, vector<1x4x18x18xf32>
    %38 = vector.shape_cast %37 : vector<1x4x18x18xf32> to vector<4x18x18xf32>
    %39 = arith.subf %1, %38 : vector<4x18x18xf32>
    %40 = arith.mulf %39, %39 : vector<4x18x18xf32>
    %cst_35 = arith.constant dense<0.000000e+00> : vector<18x18xf32>
    %41 = vector.multi_reduction <add>, %40, %cst_35 [0] : vector<4x18x18xf32> to vector<18x18xf32>
    %c0_36 = arith.constant 0 : index
    %c0_37 = arith.constant 0 : index
    %c1_38 = arith.constant 1 : index
    %c3_39 = arith.constant 3 : index
    %42 = vector.load %arg1[%c0_36, %c0_37, %c1_38, %c3_39] : memref<1x4x25x25xf32, #tpu.memory_space<vmem>>, vector<1x4x18x18xf32>
    %43 = vector.shape_cast %42 : vector<1x4x18x18xf32> to vector<4x18x18xf32>
    %44 = arith.subf %1, %43 : vector<4x18x18xf32>
    %45 = arith.mulf %44, %44 : vector<4x18x18xf32>
    %cst_40 = arith.constant dense<0.000000e+00> : vector<18x18xf32>
    %46 = vector.multi_reduction <add>, %45, %cst_40 [0] : vector<4x18x18xf32> to vector<18x18xf32>
    %47 = vector.shape_cast %6 : vector<18x18xf32> to vector<1x18x18xf32>
    %48 = vector.shape_cast %11 : vector<18x18xf32> to vector<1x18x18xf32>
    %49 = vector.shape_cast %16 : vector<18x18xf32> to vector<1x18x18xf32>
    %50 = vector.shape_cast %21 : vector<18x18xf32> to vector<1x18x18xf32>
    %51 = vector.shape_cast %26 : vector<18x18xf32> to vector<1x18x18xf32>
    %52 = vector.shape_cast %31 : vector<18x18xf32> to vector<1x18x18xf32>
    %53 = vector.shape_cast %36 : vector<18x18xf32> to vector<1x18x18xf32>
    %54 = vector.shape_cast %41 : vector<18x18xf32> to vector<1x18x18xf32>
    %55 = vector.shape_cast %46 : vector<18x18xf32> to vector<1x18x18xf32>
    %56 = tpu.concatenate %47, %48, %49, %50, %51, %52, %53, %54, %55 in 0 : vector<1x18x18xf32>, vector<1x18x18xf32>, vector<1x18x18xf32>, vector<1x18x18xf32>, vector<1x18x18xf32>, vector<1x18x18xf32>, vector<1x18x18xf32>, vector<1x18x18xf32>, vector<1x18x18xf32> -> vector<9x18x18xf32>
    %57 = vector.extract_strided_slice %56 {offsets = [0, 0, 0], sizes = [9, 18, 16], strides = [1, 1, 1]} : vector<9x18x18xf32> to vector<9x18x16xf32>
    %58 = vector.extract_strided_slice %56 {offsets = [0, 0, 1], sizes = [9, 18, 16], strides = [1, 1, 1]} : vector<9x18x18xf32> to vector<9x18x16xf32>
    %59 = arith.addf %57, %58 : vector<9x18x16xf32>
    %60 = vector.extract_strided_slice %56 {offsets = [0, 0, 2], sizes = [9, 18, 16], strides = [1, 1, 1]} : vector<9x18x18xf32> to vector<9x18x16xf32>
    %61 = arith.addf %59, %60 : vector<9x18x16xf32>
    %62 = vector.extract_strided_slice %61 {offsets = [0, 0, 0], sizes = [9, 16, 16], strides = [1, 1, 1]} : vector<9x18x16xf32> to vector<9x16x16xf32>
    %63 = vector.extract_strided_slice %61 {offsets = [0, 1, 0], sizes = [9, 16, 16], strides = [1, 1, 1]} : vector<9x18x16xf32> to vector<9x16x16xf32>
    %64 = arith.addf %62, %63 : vector<9x16x16xf32>
    %65 = vector.extract_strided_slice %61 {offsets = [0, 2, 0], sizes = [9, 16, 16], strides = [1, 1, 1]} : vector<9x18x16xf32> to vector<9x16x16xf32>
    %66 = arith.addf %64, %65 : vector<9x16x16xf32>
    %c0_41 = arith.constant 0 : index
    %c0_42 = arith.constant 0 : index
    %c0_43 = arith.constant 0 : index
    %c0_44 = arith.constant 0 : index
    %67 = vector.load %arg2[%c0_41, %c0_42, %c0_43, %c0_44] : memref<1x9x16x16xf32, #tpu.memory_space<vmem>>, vector<1x9x16x16xf32>
    %68 = vector.shape_cast %67 : vector<1x9x16x16xf32> to vector<9x16x16xf32>
    %69 = vector.shape_cast %66 : vector<9x16x16xf32> to vector<1x9x16x16xf32>
    tpu.vector_store %arg2[%c0_41, %c0_42, %c0_43, %c0_44], %69 {strides = array<i32>} : memref<1x9x16x16xf32, #tpu.memory_space<vmem>>, vector<1x9x16x16xf32>,
    %cst_45 = arith.constant dense<0.000000e+00> : vector<9x16xf32>
    %70 = vector.multi_reduction <add>, %66, %cst_45 [2] : vector<9x16x16xf32> to vector<9x16xf32>
    %71 = vector.shape_cast %70 : vector<9x16xf32> to vector<9x16x1xf32>
    %cst_46 = arith.constant dense<0.000000e+00> : vector<9x1xf32>
    %72 = vector.multi_reduction <add>, %71, %cst_46 [1] : vector<9x16x1xf32> to vector<9x1xf32>
    %73 = vector.shape_cast %72 : vector<9x1xf32> to vector<9x1x1xf32>
    %cst_47 = arith.constant dense<0.000000e+00> : vector<1x1xf32>
    %74 = vector.multi_reduction <add>, %73, %cst_47 [0] : vector<9x1x1xf32> to vector<1x1xf32>
    %75 = vector.shape_cast %74 : vector<1x1xf32> to vector<1x1x1xf32>
    %c0_48 = arith.constant 0 : index
    %c0_49 = arith.constant 0 : index
    %c0_50 = arith.constant 0 : index
    %76 = vector.load %arg3[%c0_48, %c0_49, %c0_50] : memref<1x1x1xf32, #tpu.memory_space<vmem>>, vector<1x1x1xf32>
    tpu.vector_store %arg3[%c0_48, %c0_49, %c0_50], %75 {strides = array<i32>} : memref<1x1x1xf32, #tpu.memory_space<vmem>>, vector<1x1x1xf32>,
    return
  }
  func.func @transform_0(%arg0: i32) -> (i32, i32, i32, i32) {
    %c0_i32 = arith.constant 0 : i32
    %c0_i32_0 = arith.constant 0 : i32
    %c0_i32_1 = arith.constant 0 : i32
    %c0_i32_2 = arith.constant 0 : i32
    return %arg0, %c0_i32, %c0_i32_0, %c0_i32_1 : i32, i32, i32, i32
  }
  func.func @transform_1(%arg0: i32) -> (i32, i32, i32, i32) {
    %c0_i32 = arith.constant 0 : i32
    %c0_i32_0 = arith.constant 0 : i32
    %c0_i32_1 = arith.constant 0 : i32
    %c0_i32_2 = arith.constant 0 : i32
    return %arg0, %c0_i32, %c0_i32_0, %c0_i32_1 : i32, i32, i32, i32
  }
  func.func @transform_2(%arg0: i32) -> (i32, i32, i32) {
    %c0_i32 = arith.constant 0 : i32
    %c0_i32_0 = arith.constant 0 : i32
    %c0_i32_1 = arith.constant 0 : i32
    return %arg0, %c0_i32, %c0_i32_0 : i32, i32, i32
  }
}

</mosaic_0001>

<bundles_post_ra>
// kernel: tpu_custom_call.1
= control target key start
LH: loop header
LB: loop body
LE: loop exit
PB: predicated region body
PF: predicated region fallthrough
CT: control target
= control target key end

     0   :  { %8 = vsyncpa [#allocation3], 0  ;;  %s2565_s0 = inlined_call_operand.vmem [shape: f32[2,4,25,25], index: 0, kind: input, shape index: {}]   ;;  %s2566_s1 = inlined_call_operand.hbm [shape: f32[2,9,16,16], index: 1, kind: output, shape index: {0}]   ;;  %s2567_s2 = inlined_call_operand.vmem [shape: f32[2,1,1], index: 2, kind: output, shape index: {1}]  }
   0x1   :  { %10 = vsyncpa [#allocation3 + $0x1], 0  ;;  %s1734_s9 = smov 0   ;;  %s1736_s10 = smov 0  }
   0x2   :  { %s1738_s11 = smov 0   ;;  %s1740_s12 = smov 0  }
   0x3 LB: > { %s1755_s13 = sadd.s32 4294967295, %s1711_s12   ;;  %s1581_s14 = sadd.s32 4294967294, %s1711_s12   ;;  %s1711_s12 = sphi %s1740_s12, %s2573_s12   ;;  %s1707_s11 = sphi %s1738_s11, %s2572_s11   ;;  %s1703_s10 = sphi %s1736_s10, %s2571_s10   ;;  %s1699_s9 = sphi %s1734_s9, %s2570_s9  }
   0x4   : > { %s1759_s15 = sadd.s32 1, %s1711_s12   ;;  %s49_s16 = sadd.s32 1, %s1707_s11 }
   0x5   : > { %s46_s17 = ssub.s32 %s1711_s12, %s1759_s15  ;;  %p59_p0 = scmp.ne.s32.totalorder %s1707_s11, %s1703_s10 }
   0x6   : > { %p47_p1 = scmp.eq.s32.totalorder %s46_s17, 0  ;;  %p60_p2 = scmp.eq.s32.totalorder %s1755_s13, 1 }
   0x7   : > { %p65_p3 = scmp.ne.s32.totalorder %s1703_s10, %s1699_s9  ;;  %p66_p4 = scmp.eq.s32.totalorder %s1581_s14, 1 }
   0x8   : > { %s1770_s18 = scalar_select %p47_p1, %s1707_s11, %s49_s16  }
   0x9   : > { %p1772_p5 = por %p60_p2, %p59_p0  ;;  %p1776_p6 = por %p66_p4, %p65_p3 }
   0xa   : > { %p1584_p7 = scmp.ge.s32.totalorder %s1711_s12, 1  ;;  %p118_p8 = scmp.lt.s32.totalorder %s1711_s12, 3 }
   0xc   : > { %p119_p9 = pnand %p1584_p7, %p118_p8 }
   0xd   : > { %p143_p10 = scmp.lt.s32.totalorder (!%p119_p9), %s1755_s13, 1  ;;  %s1713_s26 = smov (!%p119_p9), 126   ;;  %vm262_vm0 = vcmask (!%p119_p9), 164888   ;;  %vm247_vm1 = vcmask (!%p119_p9), 171032   ;;  %vm1137_vm2 = vcmask (!%p119_p9), 1046528   ;;  %vm1210_vm3 = vcmask (!%p119_p9), 1045504  }
   0xe   : > { %122 = sbr.rel (%p119_p9) target bundleno = 725 (0x2d5), region = 24  ;;  %s1714_s27 = smov (!%p119_p9), 127   ;;  %vm1347_vm4 = vcmask (!%p119_p9), 130048  }
   0xf   : > { %s1715_s28 = smov (!%p119_p9), 125   ;;  %s135_s29 = sand.u32 (!%p119_p9), 1, %s1703_s10  }
  0x10   : > { %s1591_s30 = smul.u32 (!%p119_p9), 144, %s135_s29  ;;  %s2520_s14 = scalar_lea.sflag (!%p119_p9), [#allocation3], %s135_s29 }
  0x11   : > { %s1592_s4 = smul.u32 (!%p119_p9), 2304, %s1755_s13 }
  0x12   : > { %s2455_s3 = scalar_lea.vmem (!%p119_p9), [#allocation2], %s1591_s30 }
  0x13   : > { %s1497_s5 = sshll.u32 (!%p119_p9), %s2455_s3, 4  ;;  %s2514_s8 = scalar_lea.hbm (!%p119_p9), %s2566_s1, %s1592_s4  ;;  %s2516_s5 = int_to_ptr.vmem [resolvable:$true] %s1497_s5 }
  0x14   : > { %s1649_s16 = scalar_lea.vmem (!%p119_p9), %s2516_s5, 2304 }
  0x15   : > { %s1784_s21 = scalar_select %p143_p10, %s1755_s13, 1 }
  0x16   : > { %p1650_p11 = scmp.ne.s32.totalorder %s2516_s5, %s1649_s16  ;;  %s1716_s13 = smov [#allocation2]  }
  0x17   : > { %s1590_s22 = sshll.u32 %s1784_s21, 7  ;;  %s1653_s17 = sshll.u32 %s1716_s13, 4  ;;  %s1654_s17 = int_to_ptr.vmem [resolvable:$false] %s1653_s17 }
  0x18   : > { %s1790_s25 = scalar_lea.vmem %s2565_s0, %s1590_s22  ;;  %p1651_p12 = pnand %p1650_p11, %p1772_p5 }
  0x19   : > { %v165_v0 = vld [vmem:[%s1790_s25 + $0x15] sm:$0x3]  ;;  %v163_v1 = vld [vmem:[%s1790_s25 + $0x5] sm:$0xff]  ;;  %v164_v3 = vld [vmem:[%s1790_s25 + $0xd] sm:$0xff]  ;;  %s1655_s22 = scalar_lea.vmem %s1654_s17, 4608  ;;  %p1656_p0 = scmp.lt.s32.totalorder %s2516_s5, %s1654_s17 }
  0x1a   : > { %191 = vrot.lane.b32.xlu1 %v165_v0, %s1713_s26  ;;  %187 = vrot.lane.b32.xlu0 %v163_v1, %s1713_s26  ;;  %v166_v2 = vld [vmem:[%s1790_s25 + $0x25] sm:$0xff]  ;;  %v168_v4 = vld [vmem:[%s1790_s25 + $0x35] sm:$0x3]  ;;  %p1652_p13 = pneg %p1651_p12  ;;  %p1657_p1 = scmp.lt.s32.totalorder %s1655_s22, %s1649_s16 }
  0x1b   : > { %v167_v5 = vld [vmem:[%s1790_s25 + $0x2d] sm:$0xff]  ;;  %v169_v7 = vld [vmem:[%s1790_s25 + $0x45] sm:$0xff]  ;;  %v171_v9 = vld [vmem:[%s1790_s25 + $0x55] sm:$0x3] }
  0x1c   : > { %v170_v6 = vld [vmem:[%s1790_s25 + $0x4d] sm:$0xff]  ;;  %v172_v8 = vld [vmem:[%s1790_s25 + $0x65] sm:$0xff]  ;;  %v174_v10 = vld [vmem:[%s1790_s25 + $0x75] sm:$0x3]  ;;  %p1658_p2 = por %p1657_p1, %p1656_p0 }
  0x1d   : > { %v173_v11 = vld [vmem:[%s1790_s25 + $0x6d] sm:$0xff]  ;;  %v270_v13 = vld [vmem:[%s1790_s25 + $0x4] sm:$0xff] }
  0x1e   : > { %193 = vrot.lane.b32.xlu1 %v166_v2, %s1713_s26  ;;  %189 = vrot.lane.b32.xlu0 %v164_v3, %s1713_s26  ;;  %v271_v12 = vld [vmem:[%s1790_s25 + $0xc] sm:$0xff]  ;;  %v273_v14 = vld [vmem:[%s1790_s25 + $0x24] sm:$0xff]  ;;  %p1659_p3 = pnand %p1658_p2, %p1652_p13 }
  0x1f   : > { %v272_v15 = vld [vmem:[%s1790_s25 + $0x14] sm:$0x3]  ;;  %v274_v17 = vld [vmem:[%s1790_s25 + $0x2c] sm:$0xff]  ;;  %v276_v19 = vld [vmem:[%s1790_s25 + $0x44] sm:$0xff] }
  0x20   : > { %v275_v16 = vld [vmem:[%s1790_s25 + $0x34] sm:$0x3]  ;;  %v277_v18 = vld [vmem:[%s1790_s25 + $0x4c] sm:$0xff]  ;;  %v279_v20 = vld [vmem:[%s1790_s25 + $0x64] sm:$0xff] }
  0x21   : > { %v278_v21 = vld [vmem:[%s1790_s25 + $0x54] sm:$0x3]  ;;  %v280_v22 = vld [vmem:[%s1790_s25 + $0x6c] sm:$0xff]  ;;  %v1838_v23 = vld [vmem:[%s1790_s25 + $0x3] sm:$0xff] }
  0x22   : > { %197 = vrot.lane.b32.xlu1 %v168_v4, %s1713_s26  ;;  %195 = vrot.lane.b32.xlu0 %v167_v5, %s1713_s26  ;;  %v1844_v24 = vld [vmem:[%s1790_s25 + $0xb] sm:$0xff]  ;;  %v1847_v25 = vld [vmem:[%s1790_s25 + $0x13] sm:$0x3] }
  0x23   : > { %v1854_v26 = vld [vmem:[%s1790_s25 + $0x23] sm:$0xff]  ;;  %v1857_v27 = vld [vmem:[%s1790_s25 + $0x2b] sm:$0xff]  ;;  %v1864_v28 = vld [vmem:[%s1790_s25 + $0x33] sm:$0x3] }
  0x24   : > { %v281_v29 = vld [vmem:[%s1790_s25 + $0x74] sm:$0x3]  ;;  %v1871_v30 = vld [vmem:[%s1790_s25 + $0x43] sm:$0xff]  ;;  %v1874_v31 = vld [vmem:[%s1790_s25 + $0x4b] sm:$0xff] }
  0x25   : > { %v1881_v32 = vld [vmem:[%s1790_s25 + $0x53] sm:$0x3]  ;;  %v1884_v33 = vld [vmem:[%s1790_s25 + $0x63] sm:$0xff]  ;;  %v1891_v34 = vld [vmem:[%s1790_s25 + $0x6b] sm:$0xff] }
  0x26   : > { %201 = vrot.lane.b32.xlu1 %v170_v6, %s1713_s26  ;;  %199 = vrot.lane.b32.xlu0 %v169_v7, %s1713_s26  ;;  %v1894_v35 = vld [vmem:[%s1790_s25 + $0x73] sm:$0x3]  ;;  %v525_v36 = vld [vmem:[%s1790_s25 + $0x2] sm:$0xff] }
  0x27   : > { %v526_v37 = vld [vmem:[%s1790_s25 + $0xa] sm:$0xff]  ;;  %v527_v38 = vld [vmem:[%s1790_s25 + $0x12] sm:$0x3]  ;;  %v528_v39 = vld [vmem:[%s1790_s25 + $0x22] sm:$0xff] }
  0x28   : > { %v529_v40 = vld [vmem:[%s1790_s25 + $0x2a] sm:$0xff]  ;;  %v530_v41 = vld [vmem:[%s1790_s25 + $0x32] sm:$0x3]  ;;  %v531_v42 = vld [vmem:[%s1790_s25 + $0x42] sm:$0xff] }
  0x29   : > { %v532_v43 = vld [vmem:[%s1790_s25 + $0x4a] sm:$0xff]  ;;  %v533_v44 = vld [vmem:[%s1790_s25 + $0x52] sm:$0x3]  ;;  %v630_v45 = vld [vmem:[%s1790_s25] sm:$0xff] }
  0x2a   : > { %205 = vrot.lane.b32.xlu1 %v172_v8, %s1713_s26  ;;  %203 = vrot.lane.b32.xlu0 %v171_v9, %s1713_s26  ;;  %v631_v46 = vld [vmem:[%s1790_s25 + $0x8] sm:$0xff]  ;;  %v632_v47 = vld [vmem:[%s1790_s25 + $0x10] sm:$0x3] }
  0x2b   : > { %v633_v48 = vld [vmem:[%s1790_s25 + $0x20] sm:$0xff]  ;;  %v634_v49 = vld [vmem:[%s1790_s25 + $0x28] sm:$0xff]  ;;  %v635_v50 = vld [vmem:[%s1790_s25 + $0x30] sm:$0x3] }
  0x2c   : > { %v534_v51 = vld [vmem:[%s1790_s25 + $0x62] sm:$0xff]  ;;  %v535_v52 = vld [vmem:[%s1790_s25 + $0x6a] sm:$0xff]  ;;  %v536_v53 = vld [vmem:[%s1790_s25 + $0x72] sm:$0x3] }
  0x2d   : > { %v1937_v54 = vld [vmem:[%s1790_s25 + $0x40] sm:$0xff]  ;;  %v1940_v55 = vld [vmem:[%s1790_s25 + $0x48] sm:$0xff]  ;;  %v1947_v56 = vld [vmem:[%s1790_s25 + $0x50] sm:$0x3] }
  0x2e   : > { %209 = vrot.lane.b32.xlu1 %v174_v10, %s1713_s26  ;;  %207 = vrot.lane.b32.xlu0 %v173_v11, %s1713_s26  ;;  %v1957_v61 = vld [vmem:[%s1790_s25 + $0x60] sm:$0xff]  ;;  %v1963_v0 = vld [vmem:[%s1790_s25 + $0x68] sm:$0xff] }
  0x2f   : > { %v1966_v1 = vld [vmem:[%s1790_s25 + $0x70] sm:$0x3] }
  0x32   : > { %296 = vrot.lane.b32.xlu1 %v271_v12, %s1714_s27  ;;  %294 = vrot.lane.b32.xlu0 %v270_v13, %s1714_s27 }
  0x36   : > { %300 = vrot.lane.b32.xlu1 %v273_v14, %s1714_s27  ;;  %298 = vrot.lane.b32.xlu0 %v272_v15, %s1714_s27 }
  0x3a   : > { %304 = vrot.lane.b32.xlu1 %v275_v16, %s1714_s27  ;;  %302 = vrot.lane.b32.xlu0 %v274_v17, %s1714_s27 }
  0x3e   : > { %308 = vrot.lane.b32.xlu1 %v277_v18, %s1714_s27  ;;  %306 = vrot.lane.b32.xlu0 %v276_v19, %s1714_s27 }
  0x42   : > { %312 = vrot.lane.b32.xlu1 %v279_v20, %s1714_s27  ;;  %310 = vrot.lane.b32.xlu0 %v278_v21, %s1714_s27 }
  0x46   : > { %314 = vrot.lane.b32.xlu0 %v280_v22, %s1714_s27  ;;  %387 = vrot.lane.b32.xlu1 %v1838_v23, %s1715_s28 }
  0x4a   : > { %389 = vrot.lane.b32.xlu0 %v1844_v24, %s1715_s28  ;;  %391 = vrot.lane.b32.xlu1 %v1847_v25, %s1715_s28 }
  0x4e   : > { %393 = vrot.lane.b32.xlu0 %v1854_v26, %s1715_s28  ;;  %395 = vrot.lane.b32.xlu1 %v1857_v27, %s1715_s28 }
  0x52   : > { %397 = vrot.lane.b32.xlu0 %v1864_v28, %s1715_s28  ;;  %316 = vrot.lane.b32.xlu1 %v281_v29, %s1714_s27 }
  0x56   : > { %399 = vrot.lane.b32.xlu0 %v1871_v30, %s1715_s28  ;;  %401 = vrot.lane.b32.xlu1 %v1874_v31, %s1715_s28 }
  0x5a   : > { %403 = vrot.lane.b32.xlu0 %v1881_v32, %s1715_s28  ;;  %405 = vrot.lane.b32.xlu1 %v1884_v33, %s1715_s28 }
  0x5e   : > { %407 = vrot.lane.b32.xlu0 %v1891_v34, %s1715_s28  ;;  %409 = vrot.lane.b32.xlu1 %v1894_v35, %s1715_s28 }
  0x62   : > { %549 = vrot.lane.b32.xlu0 %v525_v36, %s1714_s27  ;;  %551 = vrot.lane.b32.xlu1 %v526_v37, %s1714_s27 }
  0x66   : > { %553 = vrot.lane.b32.xlu0 %v527_v38, %s1714_s27  ;;  %555 = vrot.lane.b32.xlu1 %v528_v39, %s1714_s27 }
  0x6a   : > { %557 = vrot.lane.b32.xlu0 %v529_v40, %s1714_s27  ;;  %559 = vrot.lane.b32.xlu1 %v530_v41, %s1714_s27 }
  0x6e   : > { %561 = vrot.lane.b32.xlu0 %v531_v42, %s1714_s27  ;;  %563 = vrot.lane.b32.xlu1 %v532_v43, %s1714_s27 }
  0x72   : > { %565 = vrot.lane.b32.xlu0 %v533_v44, %s1714_s27  ;;  %654 = vrot.lane.b32.xlu1 %v630_v45, %s1715_s28 }
  0x76   : > { %656 = vrot.lane.b32.xlu0 %v631_v46, %s1715_s28  ;;  %658 = vrot.lane.b32.xlu1 %v632_v47, %s1715_s28 }
  0x7a   : > { %660 = vrot.lane.b32.xlu0 %v633_v48, %s1715_s28  ;;  %662 = vrot.lane.b32.xlu1 %v634_v49, %s1715_s28 }
  0x7e   : > { %664 = vrot.lane.b32.xlu0 %v635_v50, %s1715_s28  ;;  %567 = vrot.lane.b32.xlu1 %v534_v51, %s1714_s27 }
  0x82   : > { %569 = vrot.lane.b32.xlu0 %v535_v52, %s1714_s27  ;;  %571 = vrot.lane.b32.xlu1 %v536_v53, %s1714_s27 }
  0x86   : > { %666 = vrot.lane.b32.xlu0 %v1937_v54, %s1715_s28  ;;  %668 = vrot.lane.b32.xlu1 %v1940_v55, %s1715_s28 }
  0x8a   : > { %670 = vrot.lane.b32.xlu0 %v1947_v56, %s1715_s28  ;;  %735 = vrot.lane.b32.xlu1 %v630_v45, %s1713_s26 }
  0x8c   : > { %v192_v57 = vpop.permute.xlu1 %191  ;;  %v188_v58 = vpop.permute.xlu0 %187 }
  0x8d   : > { %v225_v15 = vsub.f32 %v1847_v25, %v192_v57  ;;  %v223_v16 = vsub.f32 %v1838_v23, %v188_v58 }
  0x8e   : > { %737 = vrot.lane.b32.xlu0 %v631_v46, %s1713_s26  ;;  %739 = vrot.lane.b32.xlu1 %v632_v47, %s1713_s26 }
  0x8f   : > { %v237_v36 = vmul.f32 %v225_v15, %v225_v15  ;;  %v235_v37 = vmul.f32 %v223_v16, %v223_v16 }
  0x90   : > { %v194_v59 = vpop.permute.xlu1 %193  ;;  %v190_v60 = vpop.permute.xlu0 %189 }
  0x91   : > { %v226_v12 = vsub.f32 %v1854_v26, %v194_v59  ;;  %v224_v18 = vsub.f32 %v1844_v24, %v190_v60 }
  0x92   : > { %741 = vrot.lane.b32.xlu0 %v633_v48, %s1713_s26  ;;  %743 = vrot.lane.b32.xlu1 %v634_v49, %s1713_s26 }
  0x93   : > { %v238_v21 = vmul.f32 %v226_v12, %v226_v12  ;;  %v236_v40 = vmul.f32 %v224_v18, %v224_v18 }
  0x94   : > { %v198_v62 = vpop.permute.xlu1 %197  ;;  %v196_v63 = vpop.permute.xlu0 %195 }
  0x95   : > { %v228_v17 = vsub.f32 %v1864_v28, %v198_v62  ;;  %v227_v19 = vsub.f32 %v1857_v27, %v196_v63  ;;  %v249_v44 = vsel %vm247_vm1, %v238_v21, 0.0  ;;  %v255_v53 = vsel %vm247_vm1, %v236_v40, 0.0 }
  0x96   : > { %745 = vrot.lane.b32.xlu0 %v635_v50, %s1713_s26  ;;  %672 = vrot.lane.b32.xlu1 %v1957_v61, %s1715_s28 }
  0x97   : > { %v240_v38 = vmul.f32 %v228_v17, %v228_v17  ;;  %v239_v41 = vmul.f32 %v227_v19, %v227_v19 }
  0x98   : > { %v202_v2 = vpop.permute.xlu1 %201  ;;  %v200_v3 = vpop.permute.xlu0 %199 }
  0x99   : > { %v229_v20 = vsub.f32 %v1871_v30, %v200_v3  ;;  %v230_v39 = vsub.f32 %v1874_v31, %v202_v2  ;;  %v264_v51 = vsel %vm262_vm0, %v240_v38, 0.0  ;;  %v256_v57 = vsel %vm247_vm1, %v239_v41, 0.0 }
  0x9a   : > { %674 = vrot.lane.b32.xlu0 %v1963_v0, %s1715_s28  ;;  %676 = vrot.lane.b32.xlu1 %v1966_v1, %s1715_s28  ;;  %v257_v15 = vadd.f32 %v256_v57, %v255_v53 }
  0x9b   : > { %v241_v43 = vmul.f32 %v229_v20, %v229_v20  ;;  %v242_v52 = vmul.f32 %v230_v39, %v230_v39 }
  0x9c   : > { %v206_v4 = vpop.permute.xlu1 %205  ;;  %v204_v5 = vpop.permute.xlu0 %203 }
  0x9d   : > { %v232_v42 = vsub.f32 %v1884_v33, %v206_v4  ;;  %v231_v59 = vsub.f32 %v1881_v32, %v204_v5  ;;  %v251_v62 = vsel %vm247_vm1, %v241_v43, 0.0 }
  0x9e   : > { %747 = vrot.lane.b32.xlu0 %v1937_v54, %s1713_s26  ;;  %749 = vrot.lane.b32.xlu1 %v1940_v55, %s1713_s26 }
  0x9f   : > { %v244_v58 = vmul.f32 %v232_v42, %v232_v42 }
  0xa0   : > { %v210_v6 = vpop.permute.xlu1 %209  ;;  %v208_v7 = vpop.permute.xlu0 %207 }
  0xa1   : > { %v234_v4 = vsub.f32 %v1894_v35, %v210_v6  ;;  %v253_v18 = vsel %vm247_vm1, %v244_v58, 0.0 }
  0xa2   : > { %751 = vrot.lane.b32.xlu0 %v1947_v56, %s1713_s26  ;;  %816 = vrot.lane.b32.xlu1 %v630_v45, %s1714_s27  ;;  %v233_v45 = vsub.f32 %v1891_v34, %v208_v7 }
  0xa4   : > { %v1979_v8 = vpop.permute.xlu1 %296  ;;  %v295_v9 = vpop.permute.xlu0 %294  ;;  %v245_v7 = vmul.f32 %v233_v45, %v233_v45 }
  0xa5   : > { %v330_v63 = vsub.f32 %v1838_v23, %v295_v9  ;;  %v243_v9 = vmul.f32 %v231_v59, %v231_v59  ;;  %v331_v19 = vsub.f32 %v1844_v24, %v1979_v8 }
  0xa6   : > { %818 = vrot.lane.b32.xlu0 %v631_v46, %s1714_s27  ;;  %820 = vrot.lane.b32.xlu1 %v632_v47, %s1714_s27 }
  0xa7   : > { %v342_v6 = vmul.f32 %v330_v63, %v330_v63  ;;  %v343_v42 = vmul.f32 %v331_v19, %v331_v19 }
  0xa8   : > { %v301_v10 = vpop.permute.xlu1 %300  ;;  %v1983_v11 = vpop.permute.xlu0 %298 }
  0xa9   : > { %v333_v46 = vsub.f32 %v1854_v26, %v301_v10  ;;  %v332_v8 = vsub.f32 %v1847_v25, %v1983_v11  ;;  %v354_v11 = vsel %vm247_vm1, %v342_v6, 0.0 }
  0xaa   : > { %822 = vrot.lane.b32.xlu0 %v633_v48, %s1714_s27  ;;  %824 = vrot.lane.b32.xlu1 %v634_v49, %s1714_s27  ;;  %v263_v49 = vsel %vm262_vm0, %v237_v36, 0.0  ;;  %v260_v36 = vsel %vm247_vm1, %v245_v7, 0.0 }
  0xab   : > { %v265_v3 = vadd.f32 %v264_v51, %v263_v49  ;;  %v345_v10 = vmul.f32 %v333_v46, %v333_v46  ;;  %v344_v49 = vmul.f32 %v332_v8, %v332_v8 }
  0xac   : > { %v305_v13 = vpop.permute.xlu1 %304  ;;  %v303_v14 = vpop.permute.xlu0 %302 }
  0xad   : > { %v334_v16 = vsub.f32 %v1857_v27, %v303_v14  ;;  %v335_v20 = vsub.f32 %v1864_v28, %v305_v13 }
  0xae   : > { %826 = vrot.lane.b32.xlu0 %v635_v50, %s1714_s27  ;;  %753 = vrot.lane.b32.xlu1 %v1957_v61, %s1713_s26  ;;  %v248_v50 = vsel %vm247_vm1, %v235_v37, 0.0  ;;  %v355_v37 = vsel %vm247_vm1, %v345_v10, 0.0 }
  0xaf   : > { %v250_v60 = vadd.f32 %v249_v44, %v248_v50  ;;  %v347_v44 = vmul.f32 %v335_v20, %v335_v20 }
  0xb0   : > { %v309_v22 = vpop.permute.xlu1 %308  ;;  %v307_v29 = vpop.permute.xlu0 %306 }
  0xb1   : > { %v336_v2 = vsub.f32 %v1871_v30, %v307_v29  ;;  %v252_v17 = vadd.f32 %v251_v62, %v250_v60  ;;  %v337_v14 = vsub.f32 %v1874_v31, %v309_v22  ;;  %v246_v29 = vmul.f32 %v234_v4, %v234_v4 }
  0xb2   : > { %755 = vrot.lane.b32.xlu0 %v1963_v0, %s1713_s26  ;;  %757 = vrot.lane.b32.xlu1 %v1966_v1, %s1713_s26  ;;  %v266_v22 = vsel %vm262_vm0, %v243_v9, 0.0  ;;  %v361_v60 = vsel %vm247_vm1, %v343_v42, 0.0  ;;  %v369_v62 = vsel %vm262_vm0, %v347_v44, 0.0  ;;  %v368_v4 = vsel %vm262_vm0, %v344_v49, 0.0 }
  0xb3   : > { %v348_v21 = vmul.f32 %v336_v2, %v336_v2  ;;  %v2043_v43 = vadd.f32 %v253_v18, %v252_v17  ;;  %v349_v45 = vmul.f32 %v337_v14, %v337_v14  ;;  %v267_v58 = vadd.f32 %v266_v22, %v265_v3  ;;  %v471_v22 = vld [vmem:[%s1790_s25 + $0x21] sm:$0xff] }
  0xb4   : > { %v313_v47 = vpop.permute.xlu1 %312  ;;  %v311_v48 = vpop.permute.xlu0 %310  ;;  %v370_v18 = vadd.f32 %v369_v62, %v368_v4 }
  0xb5   : > { %v357_v46 = vsel %vm247_vm1, %v348_v21, 0.0  ;;  %v364_v63 = vsel %vm247_vm1, %v349_v45, 0.0  ;;  %v468_v21 = vld [vmem:[%s1790_s25 + $0x1] sm:$0xff] }
  0xb6   : > { %828 = vrot.lane.b32.xlu0 %v1937_v54, %s1714_s27  ;;  %830 = vrot.lane.b32.xlu1 %v1940_v55, %s1714_s27  ;;  %v258_v54 = vsel %vm247_vm1, %v242_v52, 0.0  ;;  %v339_v55 = vsub.f32 %v1884_v33, %v313_v47  ;;  %v268_v47 = vsel %vm262_vm0, %v246_v29, 0.0 }
  0xb7   : > { %v259_v13 = vadd.f32 %v258_v54, %v257_v15  ;;  %v2063_v15 = vadd.f32 %v268_v47, %v267_v58  ;;  %v469_v47 = vld [vmem:[%s1790_s25 + $0x9] sm:$0xff] }
  0xb8   : > { %v315_v12 = vpop.permute.xlu0 %314  ;;  %v388_v5 = vpop.permute.xlu1 %387  ;;  %v351_v40 = vmul.f32 %v339_v55, %v339_v55 }
  0xb9   : > { %v340_v41 = vsub.f32 %v1891_v34, %v315_v12  ;;  %v2048_v52 = vadd.f32 %v260_v36, %v259_v13  ;;  %v423_v55 = vsub.f32 %v1838_v23, %v388_v5 }
  0xba   : > { %832 = vrot.lane.b32.xlu0 %v1947_v56, %s1714_s27  ;;  %834 = vrot.lane.b32.xlu1 %v1957_v61, %s1714_s27  ;;  %v346_v56 = vmul.f32 %v334_v16, %v334_v16  ;;  %v338_v61 = vsub.f32 %v1881_v32, %v311_v48  ;;  %v356_v48 = vadd.f32 %v355_v37, %v354_v11 }
  0xbb   : > { %v352_v57 = vmul.f32 %v340_v41, %v340_v41 }
  0xbc   : > { %v390_v38 = vpop.permute.xlu0 %389  ;;  %v392_v39 = vpop.permute.xlu1 %391  ;;  %v350_v53 = vmul.f32 %v338_v61, %v338_v61  ;;  %v358_v59 = vadd.f32 %v357_v46, %v356_v48  ;;  %v474_v46 = vld [vmem:[%s1790_s25 + $0x41] sm:$0xff]  ;;  %v472_v48 = vld [vmem:[%s1790_s25 + $0x29] sm:$0xff] }
  0xbd   : > { %v366_v16 = vsel %vm247_vm1, %v352_v57, 0.0  ;;  %v424_v5 = vsub.f32 %v1844_v24, %v390_v38  ;;  %v425_v36 = vsub.f32 %v1847_v25, %v392_v39  ;;  %v480_v39 = vsub.f32 %v1838_v23, %v468_v21 }
  0xbe   : > { %836 = vrot.lane.b32.xlu0 %v1963_v0, %s1714_s27  ;;  %838 = vrot.lane.b32.xlu1 %v1966_v1, %s1714_s27  ;;  %v362_v0 = vsel %vm247_vm1, %v346_v56, 0.0  ;;  %v359_v1 = vsel %vm247_vm1, %v351_v40, 0.0  ;;  %v371_v54 = vsel %vm262_vm0, %v350_v53, 0.0  ;;  %v435_v40 = vmul.f32 %v423_v55, %v423_v55 }
  0xbf   : > { %v363_v7 = vadd.f32 %v362_v0, %v361_v60  ;;  %v2061_v12 = vadd.f32 %v359_v1, %v358_v59  ;;  %v372_v29 = vadd.f32 %v371_v54, %v370_v18  ;;  %v436_v49 = vmul.f32 %v424_v5, %v424_v5 }
  0xc0   : > { %v394_v50 = vpop.permute.xlu0 %393  ;;  %v396_v51 = vpop.permute.xlu1 %395  ;;  %v483_v53 = vsub.f32 %v1854_v26, %v471_v22  ;;  %v447_v57 = vsel %vm247_vm1, %v435_v40, 0.0  ;;  %v484_v4 = vsub.f32 %v1857_v27, %v472_v48  ;;  %v470_v40 = vld [vmem:[%s1790_s25 + $0x11] sm:$0x3] }
  0xc1   : > { %v426_v2 = vsub.f32 %v1854_v26, %v394_v50  ;;  %v365_v9 = vadd.f32 %v364_v63, %v363_v7  ;;  %v427_v6 = vsub.f32 %v1857_v27, %v396_v51  ;;  %v437_v50 = vmul.f32 %v425_v36, %v425_v36 }
  0xc2   : > { %923 = vrot.lane.b32.xlu1 %v2048_v52, %s1714_s27  ;;  %921 = vrot.lane.b32.xlu0 %v2043_v43, %s1714_s27  ;;  %v486_v63 = vsub.f32 %v1871_v30, %v474_v46  ;;  %v495_v22 = vmul.f32 %v483_v53, %v483_v53  ;;  %v496_v48 = vmul.f32 %v484_v4, %v484_v4 }
  0xc3   : > { %v438_v19 = vmul.f32 %v426_v2, %v426_v2  ;;  %v2078_v56 = vadd.f32 %v366_v16, %v365_v9  ;;  %v439_v11 = vmul.f32 %v427_v6, %v427_v6  ;;  %v481_v2 = vsub.f32 %v1844_v24, %v469_v47  ;;  %v475_v6 = vld [vmem:[%s1790_s25 + $0x49] sm:$0xff]  ;;  %v477_v47 = vld [vmem:[%s1790_s25 + $0x61] sm:$0xff] }
  0xc4   : > { %v398_v10 = vpop.permute.xlu0 %397  ;;  %v317_v3 = vpop.permute.xlu1 %316  ;;  %v454_v16 = vsel %vm247_vm1, %v436_v49, 0.0  ;;  %v461_v55 = vsel %vm262_vm0, %v437_v50, 0.0 }
  0xc5   : > { %v341_v17 = vsub.f32 %v1894_v35, %v317_v3  ;;  %v428_v20 = vsub.f32 %v1864_v28, %v398_v10  ;;  %v448_v42 = vsel %vm247_vm1, %v438_v19, 0.0  ;;  %v455_v7 = vsel %vm247_vm1, %v439_v11, 0.0 }
  0xc6   : > { %927 = vrot.lane.b32.xlu1 %v2061_v12, %s1714_s27  ;;  %925 = vrot.lane.b32.xlu0 %v2063_v15, %s1714_s27  ;;  %v449_v62 = vadd.f32 %v448_v42, %v447_v57  ;;  %v456_v5 = vadd.f32 %v455_v7, %v454_v16  ;;  %v487_v42 = vsub.f32 %v1874_v31, %v475_v6  ;;  %v505_v7 = vsel %vm247_vm1, %v495_v22, 0.0 }
  0xc7   : > { %v353_v14 = vmul.f32 %v341_v17, %v341_v17  ;;  %v440_v44 = vmul.f32 %v428_v20, %v428_v20  ;;  %v512_v16 = vsel %vm247_vm1, %v496_v48, 0.0 }
  0xc8   : > { %v400_v37 = vpop.permute.xlu0 %399  ;;  %v402_v8 = vpop.permute.xlu1 %401 }
  0xc9   : > { %v373_v61 = vsel %vm262_vm0, %v353_v14, 0.0  ;;  %v429_v41 = vsub.f32 %v1871_v30, %v400_v37  ;;  %v430_v13 = vsub.f32 %v1874_v31, %v402_v8  ;;  %v462_v10 = vsel %vm262_vm0, %v440_v44, 0.0 }
  0xca   : > { %929 = vrot.lane.b32.xlu0 %v2078_v56, %s1714_s27  ;;  %v2086_v38 = vadd.f32 %v373_v61, %v372_v29  ;;  %v463_v36 = vadd.f32 %v462_v10, %v461_v55  ;;  %v492_v8 = vmul.f32 %v480_v39, %v480_v39  ;;  %v473_v61 = vld [vmem:[%s1790_s25 + $0x31] sm:$0x3]  ;;  %v493_v39 = vmul.f32 %v481_v2, %v481_v2 }
  0xcb   : > { %v441_v45 = vmul.f32 %v429_v41, %v429_v41  ;;  %v442_v51 = vmul.f32 %v430_v13, %v430_v13 }
  0xcc   : > { %v404_v0 = vpop.permute.xlu0 %403  ;;  %v406_v1 = vpop.permute.xlu1 %405  ;;  %931 = vrot.lane.b32.xlu1 %v2086_v38, %s1714_s27 }
  0xcd   : > { %v450_v58 = vsel %vm247_vm1, %v441_v45, 0.0  ;;  %v431_v59 = vsub.f32 %v1881_v32, %v404_v0  ;;  %v432_v60 = vsub.f32 %v1884_v33, %v406_v1  ;;  %v457_v18 = vsel %vm247_vm1, %v442_v51, 0.0  ;;  %v478_v51 = vld [vmem:[%s1790_s25 + $0x69] sm:$0xff] }
  0xce   : > { %v451_v17 = vadd.f32 %v450_v58, %v449_v62  ;;  %v458_v11 = vadd.f32 %v457_v18, %v456_v5  ;;  %v482_v0 = vsub.f32 %v1847_v25, %v470_v40  ;;  %v485_v1 = vsub.f32 %v1864_v28, %v473_v61  ;;  %v476_v58 = vld [vmem:[%s1790_s25 + $0x51] sm:$0x3] }
  0xcf   : > { %v443_v3 = vmul.f32 %v431_v59, %v431_v59  ;;  %v444_v54 = vmul.f32 %v432_v60, %v432_v60  ;;  %v489_v59 = vsub.f32 %v1884_v33, %v477_v47  ;;  %v498_v60 = vmul.f32 %v486_v63, %v486_v63  ;;  %v479_v18 = vld [vmem:[%s1790_s25 + $0x71] sm:$0x3] }
  0xd0   : > { %v408_v9 = vpop.permute.xlu0 %407  ;;  %v410_v19 = vpop.permute.xlu1 %409  ;;  %v504_v62 = vsel %vm247_vm1, %v492_v8, 0.0  ;;  %v490_v10 = vsub.f32 %v1891_v34, %v478_v51  ;;  %v488_v63 = vsub.f32 %v1881_v32, %v476_v58  ;;  %v494_v55 = vmul.f32 %v482_v0, %v482_v0 }
  0xd1   : > { %v464_v20 = vsel %vm262_vm0, %v443_v3, 0.0  ;;  %v452_v14 = vsel %vm247_vm1, %v444_v54, 0.0  ;;  %v433_v21 = vsub.f32 %v1891_v34, %v408_v9  ;;  %v434_v29 = vsub.f32 %v1894_v35, %v410_v19 }
  0xd2   : > { %v2113_v37 = vadd.f32 %v452_v14, %v451_v17  ;;  %v465_v44 = vadd.f32 %v464_v20, %v463_v36  ;;  %v499_v3 = vmul.f32 %v487_v42, %v487_v42  ;;  %v511_v54 = vsel %vm247_vm1, %v493_v39, 0.0 }
  0xd3   : > { %v445_v41 = vmul.f32 %v433_v21, %v433_v21  ;;  %v446_v13 = vmul.f32 %v434_v29, %v434_v29  ;;  %v497_v17 = vmul.f32 %v485_v1, %v485_v1  ;;  %v501_v9 = vmul.f32 %v489_v59, %v489_v59 }
  0xd4   : > { %v2118_v45 = vpop.permute.xlu0 %549  ;;  %v2120_v46 = vpop.permute.xlu1 %551  ;;  %933 = vrot.lane.b32.xlu0 %v2113_v37, %s1714_s27  ;;  %v506_v19 = vadd.f32 %v505_v7, %v504_v62  ;;  %v507_v14 = vsel %vm247_vm1, %v498_v60, 0.0  ;;  %v502_v21 = vmul.f32 %v490_v10, %v490_v10  ;;  %v513_v29 = vadd.f32 %v512_v16, %v511_v54 }
  0xd5   : > { %v459_v49 = vsel %vm247_vm1, %v445_v41, 0.0  ;;  %v466_v50 = vsel %vm262_vm0, %v446_v13, 0.0  ;;  %v514_v5 = vsel %vm247_vm1, %v499_v3, 0.0  ;;  %v491_v36 = vsub.f32 %v1894_v35, %v479_v18 }
  0xd6   : > { %v2130_v53 = vadd.f32 %v459_v49, %v458_v11  ;;  %v2132_v57 = vadd.f32 %v466_v50, %v465_v44  ;;  %v500_v8 = vmul.f32 %v488_v63, %v488_v63  ;;  %v518_v40 = vsel %vm262_vm0, %v494_v55, 0.0 }
  0xd7   : > { %v519_v61 = vsel %vm262_vm0, %v497_v17, 0.0  ;;  %v508_v22 = vadd.f32 %v507_v14, %v506_v19  ;;  %v515_v42 = vadd.f32 %v514_v5, %v513_v29  ;;  %v509_v44 = vsel %vm247_vm1, %v501_v9, 0.0 }
  0xd8   : > { %v554_v2 = vpop.permute.xlu0 %553  ;;  %v556_v4 = vpop.permute.xlu1 %555  ;;  %935 = vrot.lane.b32.xlu1 %v2130_v53, %s1714_s27  ;;  %937 = vrot.lane.b32.xlu0 %v2132_v57, %s1714_s27  ;;  %v520_v11 = vadd.f32 %v519_v61, %v518_v40  ;;  %v516_v47 = vsel %vm247_vm1, %v502_v21, 0.0  ;;  %v503_v39 = vmul.f32 %v491_v36, %v491_v36  ;;  %v521_v48 = vsel %vm262_vm0, %v500_v8, 0.0 }
  0xd9   : > { %v2169_v51 = vadd.f32 %v509_v44, %v508_v22  ;;  %v2171_v0 = vadd.f32 %v516_v47, %v515_v42  ;;  %v588_v59 = vsub.f32 %v1854_v26, %v556_v4  ;;  %v585_v10 = vsub.f32 %v1838_v23, %v2118_v45 }
  0xda   : > { %v522_v1 = vadd.f32 %v521_v48, %v520_v11  ;;  %v523_v58 = vsel %vm262_vm0, %v503_v39, 0.0  ;;  %v586_v63 = vsub.f32 %v1844_v24, %v2120_v46  ;;  %v587_v55 = vsub.f32 %v1847_v25, %v554_v2 }
  0xdb   : > { %v600_v54 = vmul.f32 %v588_v59, %v588_v59  ;;  %v597_v45 = vmul.f32 %v585_v10, %v585_v10 }
  0xdc   : > { %v558_v6 = vpop.permute.xlu0 %557  ;;  %v560_v20 = vpop.permute.xlu1 %559  ;;  %1017 = vrot.lane.b32.xlu1 %v2043_v43, %s1713_s26  ;;  %1019 = vrot.lane.b32.xlu0 %v2048_v52, %s1713_s26  ;;  %v2183_v7 = vadd.f32 %v523_v58, %v522_v1  ;;  %v598_v21 = vmul.f32 %v586_v63, %v586_v63  ;;  %v599_v2 = vmul.f32 %v587_v55, %v587_v55 }
  0xdd   : > { %v589_v4 = vsub.f32 %v1857_v27, %v558_v6  ;;  %v590_v16 = vsub.f32 %v1864_v28, %v560_v20  ;;  %v610_v20 = vsel %vm247_vm1, %v600_v54, 0.0  ;;  %v609_v8 = vsel %vm247_vm1, %v597_v45, 0.0 }
  0xde   : > { %v616_v44 = vsel %vm247_vm1, %v598_v21, 0.0  ;;  %v623_v47 = vsel %vm262_vm0, %v599_v2, 0.0 }
  0xdf   : > { %v601_v14 = vmul.f32 %v589_v4, %v589_v4  ;;  %v602_v46 = vmul.f32 %v590_v16, %v590_v16 }
  0xe0   : > { %v562_v41 = vpop.permute.xlu0 %561  ;;  %v564_v13 = vpop.permute.xlu1 %563  ;;  %1021 = vrot.lane.b32.xlu1 %v2063_v15, %s1713_s26  ;;  %1023 = vrot.lane.b32.xlu0 %v2061_v12, %s1713_s26 }
  0xe1   : > { %v591_v3 = vsub.f32 %v1871_v30, %v562_v41  ;;  %v592_v17 = vsub.f32 %v1874_v31, %v564_v13  ;;  %v611_v13 = vadd.f32 %v610_v20, %v609_v8  ;;  %v617_v22 = vsel %vm247_vm1, %v601_v14, 0.0 }
  0xe2   : > { %v624_v42 = vsel %vm262_vm0, %v602_v46, 0.0  ;;  %v618_v54 = vadd.f32 %v617_v22, %v616_v44 }
  0xe3   : > { %v603_v19 = vmul.f32 %v591_v3, %v591_v3  ;;  %v604_v29 = vmul.f32 %v592_v17, %v592_v17  ;;  %v625_v4 = vadd.f32 %v624_v42, %v623_v47 }
  0xe4   : > { %v566_v49 = vpop.permute.xlu0 %565  ;;  %v2163_v50 = vpop.permute.xlu1 %654  ;;  %1025 = vrot.lane.b32.xlu1 %v2078_v56, %s1713_s26  ;;  %1027 = vrot.lane.b32.xlu0 %v2086_v38, %s1713_s26 }
  0xe5   : > { %v593_v6 = vsub.f32 %v1881_v32, %v566_v49  ;;  %v612_v40 = vsel %vm247_vm1, %v603_v19, 0.0  ;;  %v619_v48 = vsel %vm247_vm1, %v604_v29, 0.0 }
  0xe6   : > { %v613_v39 = vadd.f32 %v612_v40, %v611_v13  ;;  %v620_v17 = vadd.f32 %v619_v48, %v618_v54 }
  0xe7   : > { %v605_v61 = vmul.f32 %v593_v6, %v593_v6 }
  0xe8   : > { %v2175_v60 = vpop.permute.xlu0 %656  ;;  %v2177_v62 = vpop.permute.xlu1 %658  ;;  %939 = vrot.lane.b32.xlu1 %v2169_v51, %s1714_s27  ;;  %941 = vrot.lane.b32.xlu0 %v2171_v0, %s1714_s27 }
  0xe9   : > { %v626_v58 = vsel %vm262_vm0, %v605_v61, 0.0  ;;  %v690_v61 = vsub.f32 %v1838_v23, %v2163_v50  ;;  %v691_v42 = vsub.f32 %v1844_v24, %v2175_v60 }
  0xea   : > { %v627_v45 = vadd.f32 %v626_v58, %v625_v4 }
  0xeb   : > { %v702_v50 = vmul.f32 %v690_v61, %v690_v61  ;;  %v703_v58 = vmul.f32 %v691_v42, %v691_v42 }
  0xec   : > { %v661_v18 = vpop.permute.xlu0 %660  ;;  %v663_v9 = vpop.permute.xlu1 %662  ;;  %943 = vrot.lane.b32.xlu1 %v2183_v7, %s1714_s27  ;;  %1029 = vrot.lane.b32.xlu0 %v2113_v37, %s1713_s26 }
  0xed   : > { %v694_v22 = vsub.f32 %v1857_v27, %v663_v9 }
  0xf0   : > { %v665_v5 = vpop.permute.xlu0 %664  ;;  %v568_v36 = vpop.permute.xlu1 %567  ;;  %1031 = vrot.lane.b32.xlu1 %v2130_v53, %s1713_s26  ;;  %1033 = vrot.lane.b32.xlu0 %v2132_v57, %s1713_s26 }
  0xf1   : > { %v594_v41 = vsub.f32 %v1884_v33, %v568_v36  ;;  %v693_v36 = vsub.f32 %v1854_v26, %v661_v18  ;;  %v695_v18 = vsub.f32 %v1864_v28, %v665_v5  ;;  %v706_v5 = vmul.f32 %v694_v22, %v694_v22 }
  0xf3   : > { %v606_v11 = vmul.f32 %v594_v41, %v594_v41  ;;  %v705_v13 = vmul.f32 %v693_v36, %v693_v36 }
  0xf4   : > { %v570_v49 = vpop.permute.xlu0 %569  ;;  %v572_v1 = vpop.permute.xlu1 %571 }
  0xf5   : > { %v614_v59 = vsel %vm247_vm1, %v606_v11, 0.0  ;;  %v595_v10 = vsub.f32 %v1891_v34, %v570_v49  ;;  %v596_v3 = vsub.f32 %v1894_v35, %v572_v1  ;;  %v692_v11 = vsub.f32 %v1847_v25, %v2177_v62 }
  0xf6   : > { %v2216_v16 = vadd.f32 %v614_v59, %v613_v39  ;;  %v715_v9 = vsel %vm247_vm1, %v705_v13, 0.0  ;;  %v707_v1 = vmul.f32 %v695_v18, %v695_v18 }
  0xf7   : > { %v607_v63 = vmul.f32 %v595_v10, %v595_v10  ;;  %v608_v55 = vmul.f32 %v596_v3, %v596_v3  ;;  %v704_v60 = vmul.f32 %v692_v11, %v692_v11  ;;  %v714_v3 = vsel %vm247_vm1, %v702_v50, 0.0 }
  0xf8   : > { %v667_v19 = vpop.permute.xlu0 %666  ;;  %v669_v6 = vpop.permute.xlu1 %668  ;;  %945 = vrot.lane.b32.xlu1 %v2216_v16, %s1714_s27 }
  0xf9   : > { %v621_v20 = vsel %vm247_vm1, %v607_v63, 0.0  ;;  %v628_v14 = vsel %vm262_vm0, %v608_v55, 0.0  ;;  %v696_v41 = vsub.f32 %v1871_v30, %v667_v19  ;;  %v697_v44 = vsub.f32 %v1874_v31, %v669_v6 }
  0xfa   : > { %v2222_v46 = vadd.f32 %v621_v20, %v620_v17  ;;  %v2224_v21 = vadd.f32 %v628_v14, %v627_v45  ;;  %v716_v55 = vadd.f32 %v715_v9, %v714_v3  ;;  %v722_v17 = vsel %vm247_vm1, %v706_v5, 0.0 }
  0xfb   : > { %v708_v48 = vmul.f32 %v696_v41, %v696_v41  ;;  %v709_v59 = vmul.f32 %v697_v44, %v697_v44  ;;  %v729_v45 = vsel %vm262_vm0, %v707_v1, 0.0  ;;  %v721_v6 = vsel %vm247_vm1, %v703_v58, 0.0 }
  0xfc   : > { %v671_v2 = vpop.permute.xlu0 %670  ;;  %v2226_v29 = vpop.permute.xlu1 %735  ;;  %949 = vrot.lane.b32.xlu1 %v2224_v21, %s1714_s27  ;;  %947 = vrot.lane.b32.xlu0 %v2222_v46, %s1714_s27  ;;  %v728_v20 = vsel %vm262_vm0, %v704_v60, 0.0  ;;  %v723_v42 = vadd.f32 %v722_v17, %v721_v6 }
  0xfd   : > { %v698_v49 = vsub.f32 %v1881_v32, %v671_v2  ;;  %v717_v54 = vsel %vm247_vm1, %v708_v48, 0.0  ;;  %v724_v2 = vsel %vm247_vm1, %v709_v59, 0.0  ;;  %v730_v11 = vadd.f32 %v729_v45, %v728_v20 }
  0xfe   : > { %v718_v14 = vadd.f32 %v717_v54, %v716_v55 }
  0xff   : > { %v710_v4 = vmul.f32 %v698_v49, %v698_v49  ;;  %v725_v49 = vadd.f32 %v724_v2, %v723_v42 }
 0x100   : > { %v2233_v8 = vpop.permute.xlu0 %737  ;;  %v2235_v40 = vpop.permute.xlu1 %739  ;;  %1037 = vrot.lane.b32.xlu1 %v2171_v0, %s1713_s26  ;;  %1035 = vrot.lane.b32.xlu0 %v2169_v51, %s1713_s26 }
 0x101   : > { %v731_v41 = vsel %vm262_vm0, %v710_v4, 0.0  ;;  %v772_v6 = vsub.f32 %v1844_v24, %v2233_v8 }
 0x102   : > { %v732_v9 = vadd.f32 %v731_v41, %v730_v11 }
 0x104   : > { %v742_v47 = vpop.permute.xlu0 %741  ;;  %v744_v39 = vpop.permute.xlu1 %743  ;;  %1039 = vrot.lane.b32.xlu0 %v2183_v7, %s1713_s26 }
 0x105   : > { %v774_v4 = vsub.f32 %v1854_v26, %v742_v47  ;;  %v775_v45 = vsub.f32 %v1857_v27, %v744_v39  ;;  %v773_v47 = vsub.f32 %v1847_v25, %v2235_v40 }
 0x107   : > { %v786_v20 = vmul.f32 %v774_v4, %v774_v4  ;;  %v787_v27 = vmul.f32 %v775_v45, %v775_v45 }
 0x108   : > { %v746_v10 = vpop.permute.xlu0 %745  ;;  %v673_v62 = vpop.permute.xlu1 %672 }
 0x109   : > { %v699_v63 = vsub.f32 %v1884_v33, %v673_v62  ;;  %v776_v26 = vsub.f32 %v1864_v28, %v746_v10  ;;  %v796_v24 = vsel %vm247_vm1, %v786_v20, 0.0  ;;  %v785_v10 = vmul.f32 %v773_v47, %v773_v47 }
 0x10a   : > { %v803_v40 = vsel %vm247_vm1, %v787_v27, 0.0 }
 0x10b   : > { %v711_v19 = vmul.f32 %v699_v63, %v699_v63  ;;  %v771_v63 = vsub.f32 %v1838_v23, %v2226_v29  ;;  %v788_v28 = vmul.f32 %v776_v26, %v776_v26  ;;  %v1639_v26 = vld [vmem:[%s1790_s25 + $0x2b] sm:$0xff] }
 0x10c   : > { %v675_v36 = vpop.permute.xlu0 %674  ;;  %v677_v61 = vpop.permute.xlu1 %676 }
 0x10d   : > { %v719_v13 = vsel %vm247_vm1, %v711_v19, 0.0  ;;  %v700_v22 = vsub.f32 %v1891_v34, %v675_v36  ;;  %v701_v18 = vsub.f32 %v1894_v35, %v677_v61  ;;  %v783_v29 = vmul.f32 %v771_v63, %v771_v63 }
 0x10e   : > { %v2267_v44 = vadd.f32 %v719_v13, %v718_v14  ;;  %v784_v36 = vmul.f32 %v772_v6, %v772_v6  ;;  %v810_v42 = vsel %vm262_vm0, %v788_v28, 0.0  ;;  %v1642_v28 = vld [vmem:[%s1790_s25 + $0x13] sm:$0x3] }
 0x10f   : > { %v712_v50 = vmul.f32 %v700_v22, %v700_v22  ;;  %v713_v48 = vmul.f32 %v701_v18, %v701_v18 }
 0x110   : > { %v748_v5 = vpop.permute.xlu0 %747  ;;  %v750_v1 = vpop.permute.xlu1 %749  ;;  %951 = vrot.lane.b32.xlu1 %v2267_v44, %s1714_s27 }
 0x111   : > { %v726_v58 = vsel %vm247_vm1, %v712_v50, 0.0  ;;  %v733_v60 = vsel %vm262_vm0, %v713_v48, 0.0  ;;  %v777_v19 = vsub.f32 %v1871_v30, %v748_v5  ;;  %v778_v23 = vsub.f32 %v1874_v31, %v750_v1  ;;  %v1637_v50 = vld [vmem:[%s1790_s25 + $0x23] sm:$0xff] }
 0x112   : > { %v2273_v59 = vadd.f32 %v726_v58, %v725_v49  ;;  %v2275_v62 = vadd.f32 %v733_v60, %v732_v9  ;;  %v795_v31 = vsel %vm247_vm1, %v783_v29, 0.0  ;;  %v809_v9 = vsel %vm262_vm0, %v785_v10, 0.0  ;;  %v1638_v58 = vld [vmem:[%s1790_s25 + $0x3] sm:$0xff] }
 0x113   : > { %v789_v39 = vmul.f32 %v777_v19, %v777_v19  ;;  %v790_v8 = vmul.f32 %v778_v23, %v778_v23  ;;  %v797_v18 = vadd.f32 %v796_v24, %v795_v31  ;;  %v811_v6 = vadd.f32 %v810_v42, %v809_v9  ;;  %v1641_v24 = vld [vmem:[%s1790_s25 + $0xb] sm:$0xff] }
 0x114   : > { %v752_v3 = vpop.permute.xlu0 %751  ;;  %v817_v54 = vpop.permute.xlu1 %816  ;;  %955 = vrot.lane.b32.xlu1 %v2275_v62, %s1714_s27  ;;  %953 = vrot.lane.b32.xlu0 %v2273_v59, %s1714_s27 }
 0x115   : > { %v779_v30 = vsub.f32 %v1881_v32, %v752_v3  ;;  %v798_v41 = vsel %vm247_vm1, %v789_v39, 0.0  ;;  %v802_v32 = vsel %vm247_vm1, %v784_v36, 0.0  ;;  %v805_v11 = vsel %vm247_vm1, %v790_v8, 0.0 }
 0x116   : > { %v804_v5 = vadd.f32 %v803_v40, %v802_v32  ;;  %v799_v1 = vadd.f32 %v798_v41, %v797_v18  ;;  %v852_v60 = vsub.f32 %v1638_v58, %v817_v54  ;;  %v1640_v54 = vld [vmem:[%s1790_s25 + $0x33] sm:$0x3]  ;;  %v1644_v40 = vld [vmem:[%s1790_s25 + $0x4b] sm:$0xff] }
 0x117   : > { %v791_v13 = vmul.f32 %v779_v30, %v779_v30 }
 0x118   : > { %v819_v55 = vpop.permute.xlu0 %818  ;;  %v821_v17 = vpop.permute.xlu1 %820  ;;  %1043 = vrot.lane.b32.xlu1 %v2222_v46, %s1713_s26  ;;  %1041 = vrot.lane.b32.xlu0 %v2216_v16, %s1713_s26  ;;  %v806_v20 = vadd.f32 %v805_v11, %v804_v5  ;;  %v864_v36 = vmul.f32 %v852_v60, %v852_v60  ;;  %v1646_v60 = vld [vmem:[%s1790_s25 + $0x63] sm:$0xff] }
 0x119   : > { %v812_v4 = vsel %vm262_vm0, %v791_v13, 0.0  ;;  %v854_v8 = vsub.f32 %v1642_v28, %v821_v17 }
 0x11a   : > { %v813_v30 = vadd.f32 %v812_v4, %v811_v6  ;;  %v876_v9 = vsel %vm247_vm1, %v864_v36, 0.0  ;;  %v1648_v36 = vld [vmem:[%s1790_s25 + $0x73] sm:$0x3] }
 0x11b   : > { %v866_v11 = vmul.f32 %v854_v8, %v854_v8 }
 0x11c   : > { %v823_v14 = vpop.permute.xlu0 %822  ;;  %v825_v2 = vpop.permute.xlu1 %824  ;;  %1045 = vrot.lane.b32.xlu0 %v2224_v21, %s1713_s26 }
 0x11d   : > { %v855_v48 = vsub.f32 %v1637_v50, %v823_v14  ;;  %v856_v23 = vsub.f32 %v1639_v26, %v825_v2 }
 0x11f   : > { %v867_v47 = vmul.f32 %v855_v48, %v855_v48  ;;  %v868_v17 = vmul.f32 %v856_v23, %v856_v23 }
 0x120   : > { %v827_v61 = vpop.permute.xlu0 %826  ;;  %v754_v25 = vpop.permute.xlu1 %753 }
 0x121   : > { %v780_v22 = vsub.f32 %v1884_v33, %v754_v25  ;;  %v857_v14 = vsub.f32 %v1640_v54, %v827_v61  ;;  %v1643_v25 = vld [vmem:[%s1790_s25 + $0x43] sm:$0xff]  ;;  %v884_v4 = vsel %vm247_vm1, %v868_v17, 0.0 }
 0x123   : > { %v792_v49 = vmul.f32 %v780_v22, %v780_v22  ;;  %v869_v32 = vmul.f32 %v857_v14, %v857_v14 }
 0x124   : > { %v756_v3 = vpop.permute.xlu0 %755  ;;  %v758_v33 = vpop.permute.xlu1 %757 }
 0x125   : > { %v800_v63 = vsel %vm247_vm1, %v792_v49, 0.0  ;;  %v781_v45 = vsub.f32 %v1891_v34, %v756_v3  ;;  %v782_v19 = vsub.f32 %v1894_v35, %v758_v33  ;;  %v853_v34 = vsub.f32 %v1641_v24, %v819_v55 }
 0x126   : > { %v2315_v29 = vadd.f32 %v800_v63, %v799_v1  ;;  %v877_v55 = vsel %vm247_vm1, %v867_v47, 0.0  ;;  %v1645_v1 = vld [vmem:[%s1790_s25 + $0x53] sm:$0x3]  ;;  %v891_v63 = vsel %vm262_vm0, %v869_v32, 0.0 }
 0x127   : > { %v793_v27 = vmul.f32 %v781_v45, %v781_v45  ;;  %v794_v39 = vmul.f32 %v782_v19, %v782_v19  ;;  %v865_v42 = vmul.f32 %v853_v34, %v853_v34  ;;  %v878_v33 = vadd.f32 %v877_v55, %v876_v9 }
 0x128   : > { %v829_v35 = vpop.permute.xlu0 %828  ;;  %v831_v31 = vpop.permute.xlu1 %830  ;;  %957 = vrot.lane.b32.xlu1 %v2315_v29, %s1714_s27 }
 0x129   : > { %v807_v2 = vsel %vm247_vm1, %v793_v27, 0.0  ;;  %v814_v10 = vsel %vm262_vm0, %v794_v39, 0.0  ;;  %v858_v61 = vsub.f32 %v1643_v25, %v829_v35  ;;  %v859_v41 = vsub.f32 %v1644_v40, %v831_v31  ;;  %v1647_v39 = vld [vmem:[%s1790_s25 + $0x6b] sm:$0xff] }
 0x12a   : > { %v2326_v13 = vadd.f32 %v807_v2, %v806_v20  ;;  %v2328_v22 = vadd.f32 %v814_v10, %v813_v30  ;;  %v883_v6 = vsel %vm247_vm1, %v865_v42, 0.0  ;;  %v890_v20 = vsel %vm262_vm0, %v866_v11, 0.0 }
 0x12b   : > { %v870_v18 = vmul.f32 %v858_v61, %v858_v61  ;;  %v871_v50 = vmul.f32 %v859_v41, %v859_v41  ;;  %v885_v34 = vadd.f32 %v884_v4, %v883_v6  ;;  %v892_v28 = vadd.f32 %v891_v63, %v890_v20 }
 0x12c   : > { %v833_v48 = vpop.permute.xlu0 %832  ;;  %v835_v49 = vpop.permute.xlu1 %834  ;;  %961 = vrot.lane.b32.xlu1 %v2328_v22, %s1714_s27  ;;  %959 = vrot.lane.b32.xlu0 %v2326_v13, %s1714_s27 }
 0x12d   : > { %v879_v5 = vsel %vm247_vm1, %v870_v18, 0.0  ;;  %v860_v58 = vsub.f32 %v1645_v1, %v833_v48  ;;  %v861_v3 = vsub.f32 %v1646_v60, %v835_v49  ;;  %v886_v23 = vsel %vm247_vm1, %v871_v50, 0.0 }
 0x12e   : > { %v880_v26 = vadd.f32 %v879_v5, %v878_v33  ;;  %v887_v2 = vadd.f32 %v886_v23, %v885_v34 }
 0x12f   : > { %v872_v45 = vmul.f32 %v860_v58, %v860_v58  ;;  %v873_v19 = vmul.f32 %v861_v3, %v861_v3 }
 0x130   : > { %v837_v47 = vpop.permute.xlu0 %836  ;;  %v839_v54 = vpop.permute.xlu1 %838  ;;  %1049 = vrot.lane.b32.xlu1 %v2273_v59, %s1713_s26  ;;  %1047 = vrot.lane.b32.xlu0 %v2267_v44, %s1713_s26 }
 0x131   : > { %v893_v14 = vsel %vm262_vm0, %v872_v45, 0.0  ;;  %v881_v27 = vsel %vm247_vm1, %v873_v19, 0.0  ;;  %v862_v30 = vsub.f32 %v1647_v39, %v837_v47  ;;  %v863_v24 = vsub.f32 %v1648_v36, %v839_v54 }
 0x132   : > { %v2352_v8 = vadd.f32 %v881_v27, %v880_v26  ;;  %v894_v10 = vadd.f32 %v893_v14, %v892_v28 }
 0x133   : > { %v874_v35 = vmul.f32 %v862_v30, %v862_v30  ;;  %v875_v31 = vmul.f32 %v863_v24, %v863_v24 }
 0x134   : > { %963 = vrot.lane.b32.xlu1 %v2352_v8, %s1714_s27  ;;  %1051 = vrot.lane.b32.xlu0 %v2275_v62, %s1713_s26  ;;  %v922_v55 = vpop.permute.xlu0 %921  ;;  %v924_v17 = vpop.permute.xlu1 %923 }
 0x135   : > { %v888_v25 = vsel %vm247_vm1, %v874_v35, 0.0  ;;  %v895_v61 = vsel %vm262_vm0, %v875_v31, 0.0  ;;  %v994_v9 = vadd.f32 %v924_v17, %v2048_v52  ;;  %v993_v5 = vadd.f32 %v922_v55, %v2043_v43 }
 0x136   : > { %v2360_v40 = vadd.f32 %v888_v25, %v887_v2  ;;  %v2362_v41 = vadd.f32 %v895_v61, %v894_v10 }
 0x138   : > { %967 = vrot.lane.b32.xlu1 %v2362_v41, %s1714_s27  ;;  %965 = vrot.lane.b32.xlu0 %v2360_v40, %s1714_s27  ;;  %v926_v32 = vpop.permute.xlu0 %925  ;;  %v928_v18 = vpop.permute.xlu1 %927 }
 0x139   : > { %v995_v33 = vadd.f32 %v926_v32, %v2063_v15  ;;  %v996_v6 = vadd.f32 %v928_v18, %v2061_v12 }
 0x13c   : > { %1055 = vrot.lane.b32.xlu1 %v2326_v13, %s1713_s26  ;;  %1053 = vrot.lane.b32.xlu0 %v2315_v29, %s1713_s26  ;;  %v930_v42 = vpop.permute.xlu0 %929 }
 0x13d   : > { %v997_v43 = vadd.f32 %v930_v42, %v2078_v56 }
 0x13e   : > { %v932_v11 = vpop.permute.xlu1 %931 }
 0x13f   : > { %v998_v14 = vadd.f32 %v932_v11, %v2086_v38 }
 0x140   : > { %1059 = vrot.lane.b32.xlu1 %v2352_v8, %s1713_s26  ;;  %1057 = vrot.lane.b32.xlu0 %v2328_v22, %s1713_s26 }
 0x144   : > { %1063 = vrot.lane.b32.xlu1 %v2362_v41, %s1713_s26  ;;  %1061 = vrot.lane.b32.xlu0 %v2360_v40, %s1713_s26 }
 0x146   : > { %v934_v50 = vpop.permute.xlu0 %933 }
 0x14a   : > { %v936_v48 = vpop.permute.xlu1 %935  ;;  %v938_v49 = vpop.permute.xlu0 %937 }
 0x14e   : > { %v1018_v1 = vpop.permute.xlu1 %1017  ;;  %v1020_v58 = vpop.permute.xlu0 %1019 }
 0x14f   : > { %v1089_v60 = vadd.f32 %v1018_v1, %v993_v5  ;;  %v1090_v3 = vadd.f32 %v1020_v58, %v994_v9  ;;  %v999_v58 = vadd.f32 %v934_v50, %v2113_v37 }
 0x151   : > { %v1138_v4 = vrot.slane %v1089_v60, 1  ;;  %v1211_v63 = vrot.slane %v1089_v60, 2  ;;  %v1139_v45 = vrot.slane %v1090_v3, 1  ;;  %v1212_v19 = vrot.slane %v1090_v3, 2 }
 0x152   : > { %v1022_v20 = vpop.permute.xlu1 %1021  ;;  %v1024_v26 = vpop.permute.xlu0 %1023 }
 0x153   : > { %v1140_v52 = vsel %vm1137_vm2, %v1138_v4, %v1139_v45  ;;  %v1091_v23 = vadd.f32 %v1022_v20, %v995_v33  ;;  %v1092_v47 = vadd.f32 %v1024_v26, %v996_v6  ;;  %v1213_v39 = vsel %vm1210_vm3, %v1211_v63, %v1212_v19 }
 0x154   : > { %v1194_v54 = vadd.f32 %v1140_v52, %v1089_v60 }
 0x155   : > { %v1141_v15 = vrot.slane %v1091_v23, 1  ;;  %v1214_v27 = vrot.slane %v1091_v23, 2  ;;  %v1143_v2 = vrot.slane %v1092_v47, 1  ;;  %v1216_v32 = vrot.slane %v1092_v47, 2 }
 0x156   : > { %v1026_v30 = vpop.permute.xlu1 %1025  ;;  %v1028_v36 = vpop.permute.xlu0 %1027  ;;  %v1267_v24 = vadd.f32 %v1213_v39, %v1194_v54 }
 0x157   : > { %v1142_v12 = vsel %vm1137_vm2, %v1139_v45, %v1141_v15  ;;  %v1093_v34 = vadd.f32 %v1026_v30, %v997_v43  ;;  %v1094_v28 = vadd.f32 %v1028_v36, %v998_v14  ;;  %v1215_v31 = vsel %vm1210_vm3, %v1212_v19, %v1214_v27 }
 0x158   : > { %v1195_v35 = vadd.f32 %v1142_v12, %v1090_v3  ;;  %1299 = vrot.lane.b32.xlu0 %v1267_v24, %s1715_s28  ;;  %v1000_v45 = vadd.f32 %v936_v48, %v2130_v53  ;;  %v1001_v19 = vadd.f32 %v938_v49, %v2132_v57 }
 0x159   : > { %v1144_v56 = vrot.slane %v1093_v34, 1  ;;  %v1217_v10 = vrot.slane %v1093_v34, 2  ;;  %v1146_v38 = vrot.slane %v1094_v28, 1  ;;  %v1219_v25 = vrot.slane %v1094_v28, 2 }
 0x15a   : > { %v940_v61 = vpop.permute.xlu1 %939  ;;  %v942_v55 = vpop.permute.xlu0 %941  ;;  %v1268_v17 = vadd.f32 %v1215_v31, %v1195_v35 }
 0x15b   : > { %v1145_v18 = vsel %vm1137_vm2, %v1143_v2, %v1144_v56  ;;  %v1147_v42 = vsel %vm1137_vm2, %v1144_v56, %v1146_v38  ;;  %v1220_v5 = vsel %vm1210_vm3, %v1217_v10, %v1219_v25  ;;  %v1218_v1 = vsel %vm1210_vm3, %v1216_v32, %v1217_v10 }
 0x15c   : > { %v1197_v11 = vadd.f32 %v1147_v42, %v1093_v34  ;;  %1301 = vrot.lane.b32.xlu1 %v1268_v17, %s1715_s28  ;;  %v1196_v9 = vadd.f32 %v1145_v18, %v1092_v47  ;;  %v1002_v12 = vadd.f32 %v940_v61, %v2169_v51  ;;  %v1003_v34 = vadd.f32 %v942_v55, %v2171_v0 }
 0x15e   : > { %v944_v60 = vpop.permute.xlu1 %943  ;;  %v1030_v3 = vpop.permute.xlu0 %1029  ;;  %v1269_v33 = vadd.f32 %v1218_v1, %v1196_v9  ;;  %v1270_v4 = vadd.f32 %v1220_v5, %v1197_v11 }
 0x15f   : > { %v1095_v63 = vadd.f32 %v1030_v3, %v999_v58  ;;  %v1004_v31 = vadd.f32 %v944_v60, %v2183_v7 }
 0x160   : > { %1303 = vrot.lane.b32.xlu0 %v1269_v33, %s1715_s28  ;;  %1305 = vrot.lane.b32.xlu1 %v1270_v4, %s1715_s28 }
 0x161   : > { %v1148_v23 = vrot.slane %v1095_v63, 1  ;;  %v1221_v54 = vrot.slane %v1095_v63, 2 }
 0x162   : > { %v1032_v6 = vpop.permute.xlu1 %1031  ;;  %v1034_v20 = vpop.permute.xlu0 %1033 }
 0x163   : > { %v1096_v26 = vadd.f32 %v1032_v6, %v1000_v45  ;;  %v1097_v52 = vadd.f32 %v1034_v20, %v1001_v19 }
 0x165   : > { %v1149_v43 = vrot.slane %v1096_v26, 1  ;;  %v1222_v37 = vrot.slane %v1096_v26, 2  ;;  %v1151_v50 = vrot.slane %v1097_v52, 1  ;;  %v1224_v47 = vrot.slane %v1097_v52, 2 }
 0x167   : > { %v1150_v14 = vsel %vm1137_vm2, %v1148_v23, %v1149_v43  ;;  %v1152_v15 = vsel %vm1137_vm2, %v1149_v43, %v1151_v50  ;;  %v1225_v53 = vsel %vm1210_vm3, %v1222_v37, %v1224_v47  ;;  %v1223_v57 = vsel %vm1210_vm3, %v1221_v54, %v1222_v37 }
 0x168   : > { %v1199_v27 = vadd.f32 %v1152_v15, %v1096_v26  ;;  %v1198_v39 = vadd.f32 %v1150_v14, %v1095_v63 }
 0x16a   : > { %v946_v48 = vpop.permute.xlu1 %945  ;;  %v1271_v49 = vadd.f32 %v1223_v57, %v1198_v39  ;;  %v1272_v30 = vadd.f32 %v1225_v53, %v1199_v27 }
 0x16b   : > { %v1005_v33 = vadd.f32 %v946_v48, %v2216_v16 }
 0x16c   : > { %1307 = vrot.lane.b32.xlu0 %v1271_v49, %s1715_s28  ;;  %1309 = vrot.lane.b32.xlu1 %v1272_v30, %s1715_s28 }
 0x16e   : > { %v950_v36 = vpop.permute.xlu1 %949  ;;  %v948_v24 = vpop.permute.xlu0 %947 }
 0x16f   : > { %v1006_v4 = vadd.f32 %v948_v24, %v2222_v46  ;;  %v1007_v20 = vadd.f32 %v950_v36, %v2224_v21 }
 0x172   : > { %v1038_v28 = vpop.permute.xlu1 %1037  ;;  %v1036_v35 = vpop.permute.xlu0 %1035 }
 0x173   : > { %v1099_v2 = vadd.f32 %v1038_v28, %v1003_v34  ;;  %v1098_v56 = vadd.f32 %v1036_v35, %v1002_v12 }
 0x175   : > { %v1154_v10 = vrot.slane %v1099_v2, 1  ;;  %v1227_v38 = vrot.slane %v1099_v2, 2  ;;  %v1153_v25 = vrot.slane %v1098_v56, 1  ;;  %v1226_v17 = vrot.slane %v1098_v56, 2 }
 0x176   : > { %v1040_v32 = vpop.permute.xlu0 %1039 }
 0x177   : > { %v1155_v18 = vsel %vm1137_vm2, %v1153_v25, %v1154_v10  ;;  %v1228_v42 = vsel %vm1210_vm3, %v1226_v17, %v1227_v38  ;;  %v1100_v11 = vadd.f32 %v1040_v32, %v1004_v31 }
 0x178   : > { %v1200_v9 = vadd.f32 %v1155_v18, %v1098_v56 }
 0x179   : > { %v1156_v51 = vrot.slane %v1100_v11, 1  ;;  %v1229_v61 = vrot.slane %v1100_v11, 2 }
 0x17a   : > { %v1273_v0 = vadd.f32 %v1228_v42, %v1200_v9 }
 0x17b   : > { %v1157_v55 = vsel %vm1137_vm2, %v1154_v10, %v1156_v51  ;;  %v1230_v7 = vsel %vm1210_vm3, %v1227_v38, %v1229_v61 }
 0x17c   : > { %v1201_v5 = vadd.f32 %v1157_v55, %v1099_v2  ;;  %1311 = vrot.lane.b32.xlu0 %v1273_v0, %s1715_s28 }
 0x17e   : > { %v1274_v1 = vadd.f32 %v1230_v7, %v1201_v5 }
 0x180   : > { %1313 = vrot.lane.b32.xlu1 %v1274_v1, %s1715_s28 }
 0x182   : > { %v952_v58 = vpop.permute.xlu1 %951 }
 0x183   : > { %v1008_v30 = vadd.f32 %v952_v58, %v2267_v44 }
 0x186   : > { %v956_v60 = vpop.permute.xlu1 %955  ;;  %v954_v3 = vpop.permute.xlu0 %953 }
 0x187   : > { %v1009_v36 = vadd.f32 %v954_v3, %v2273_v59  ;;  %v1010_v35 = vadd.f32 %v956_v60, %v2275_v62 }
 0x18a   : > { %v1044_v63 = vpop.permute.xlu1 %1043  ;;  %v1042_v45 = vpop.permute.xlu0 %1041 }
 0x18b   : > { %v1102_v19 = vadd.f32 %v1044_v63, %v1006_v4  ;;  %v1101_v6 = vadd.f32 %v1042_v45, %v1005_v33 }
 0x18d   : > { %v1159_v26 = vrot.slane %v1102_v19, 1  ;;  %v1232_v52 = vrot.slane %v1102_v19, 2  ;;  %v1158_v23 = vrot.slane %v1101_v6, 1  ;;  %v1231_v43 = vrot.slane %v1101_v6, 2 }
 0x18e   : > { %v1046_v37 = vpop.permute.xlu0 %1045 }
 0x18f   : > { %v1160_v50 = vsel %vm1137_vm2, %v1158_v23, %v1159_v26  ;;  %v1103_v47 = vadd.f32 %v1046_v37, %v1007_v20  ;;  %v1233_v14 = vsel %vm1210_vm3, %v1231_v43, %v1232_v52 }
 0x190   : > { %v1202_v54 = vadd.f32 %v1160_v50, %v1101_v6 }
 0x191   : > { %v1161_v16 = vrot.slane %v1103_v47, 1  ;;  %v1234_v15 = vrot.slane %v1103_v47, 2 }
 0x192   : > { %v1275_v46 = vadd.f32 %v1233_v14, %v1202_v54 }
 0x193   : > { %v1162_v27 = vsel %vm1137_vm2, %v1159_v26, %v1161_v16  ;;  %v1235_v21 = vsel %vm1210_vm3, %v1232_v52, %v1234_v15 }
 0x194   : > { %v1203_v39 = vadd.f32 %v1162_v27, %v1102_v19  ;;  %1315 = vrot.lane.b32.xlu0 %v1275_v46, %s1715_s28 }
 0x196   : > { %v1276_v53 = vadd.f32 %v1235_v21, %v1203_v39 }
 0x198   : > { %1317 = vrot.lane.b32.xlu1 %v1276_v53, %s1715_s28 }
 0x19a   : > { %v958_v57 = vpop.permute.xlu1 %957 }
 0x19b   : > { %v1011_v0 = vadd.f32 %v958_v57, %v2315_v29 }
 0x19e   : > { %v962_v48 = vpop.permute.xlu1 %961  ;;  %v960_v49 = vpop.permute.xlu0 %959 }
 0x19f   : > { %v1012_v55 = vadd.f32 %v960_v49, %v2326_v13  ;;  %v1013_v33 = vadd.f32 %v962_v48, %v2328_v22 }
 0x1a2   : > { %v1050_v24 = vpop.permute.xlu1 %1049  ;;  %v1048_v12 = vpop.permute.xlu0 %1047 }
 0x1a3   : > { %v1105_v34 = vadd.f32 %v1050_v24, %v1009_v36  ;;  %v1104_v28 = vadd.f32 %v1048_v12, %v1008_v30 }
 0x1a5   : > { %v1164_v31 = vrot.slane %v1105_v34, 1  ;;  %v1237_v2 = vrot.slane %v1105_v34, 2  ;;  %v1163_v56 = vrot.slane %v1104_v28, 1  ;;  %v1236_v10 = vrot.slane %v1104_v28, 2 }
 0x1a6   : > { %v964_v38 = vpop.permute.xlu1 %963  ;;  %v1052_v25 = vpop.permute.xlu0 %1051 }
 0x1a7   : > { %v1165_v17 = vsel %vm1137_vm2, %v1163_v56, %v1164_v31  ;;  %v1106_v32 = vadd.f32 %v1052_v25, %v1010_v35  ;;  %v1238_v44 = vsel %vm1210_vm3, %v1236_v10, %v1237_v2  ;;  %v1014_v6 = vadd.f32 %v964_v38, %v2352_v8 }
 0x1a8   : > { %v1204_v18 = vadd.f32 %v1165_v17, %v1104_v28 }
 0x1a9   : > { %v1166_v42 = vrot.slane %v1106_v32, 1  ;;  %v1239_v59 = vrot.slane %v1106_v32, 2 }
 0x1aa   : > { %v1277_v11 = vadd.f32 %v1238_v44, %v1204_v18  ;;  %v968_v9 = vpop.permute.xlu1 %967  ;;  %v966_v51 = vpop.permute.xlu0 %965 }
 0x1ab   : > { %v1167_v61 = vsel %vm1137_vm2, %v1164_v31, %v1166_v42  ;;  %v1240_v7 = vsel %vm1210_vm3, %v1237_v2, %v1239_v59  ;;  %v1016_v52 = vadd.f32 %v968_v9, %v2362_v41  ;;  %v1015_v37 = vadd.f32 %v966_v51, %v2360_v40 }
 0x1ac   : > { %v1205_v62 = vadd.f32 %v1167_v61, %v1105_v34  ;;  %1319 = vrot.lane.b32.xlu0 %v1277_v11, %s1715_s28 }
 0x1ae   : > { %v1056_v5 = vpop.permute.xlu1 %1055  ;;  %v1054_v1 = vpop.permute.xlu0 %1053  ;;  %v1278_v58 = vadd.f32 %v1240_v7, %v1205_v62 }
 0x1af   : > { %v1108_v60 = vadd.f32 %v1056_v5, %v1012_v55  ;;  %v1107_v3 = vadd.f32 %v1054_v1, %v1011_v0 }
 0x1b0   : > { %1321 = vrot.lane.b32.xlu1 %v1278_v58, %s1715_s28 }
 0x1b1   : > { %v1169_v4 = vrot.slane %v1108_v60, 1  ;;  %v1242_v63 = vrot.slane %v1108_v60, 2  ;;  %v1168_v45 = vrot.slane %v1107_v3, 1  ;;  %v1241_v19 = vrot.slane %v1107_v3, 2 }
 0x1b2   : > { %v1060_v29 = vpop.permute.xlu1 %1059  ;;  %v1058_v20 = vpop.permute.xlu0 %1057 }
 0x1b3   : > { %v1170_v13 = vsel %vm1137_vm2, %v1168_v45, %v1169_v4  ;;  %v1109_v26 = vadd.f32 %v1058_v20, %v1013_v33  ;;  %v1110_v43 = vadd.f32 %v1060_v29, %v1014_v6  ;;  %v1243_v22 = vsel %vm1210_vm3, %v1241_v19, %v1242_v63 }
 0x1b4   : > { %v1206_v23 = vadd.f32 %v1170_v13, %v1107_v3 }
 0x1b5   : > { %v1171_v50 = vrot.slane %v1109_v26, 1  ;;  %v1244_v47 = vrot.slane %v1109_v26, 2  ;;  %v1173_v27 = vrot.slane %v1110_v43, 1  ;;  %v1246_v49 = vrot.slane %v1110_v43, 2 }
 0x1b6   : > { %v1279_v54 = vadd.f32 %v1243_v22, %v1206_v23  ;;  %v1064_v14 = vpop.permute.xlu1 %1063  ;;  %v1062_v16 = vpop.permute.xlu0 %1061 }
 0x1b7   : > { %v1172_v8 = vsel %vm1137_vm2, %v1169_v4, %v1171_v50  ;;  %v1112_v15 = vadd.f32 %v1064_v14, %v1016_v52  ;;  %v1111_v46 = vadd.f32 %v1062_v16, %v1015_v37  ;;  %v1245_v21 = vsel %vm1210_vm3, %v1242_v63, %v1244_v47 }
 0x1b8   : > { %v1207_v39 = vadd.f32 %v1172_v8, %v1108_v60  ;;  %1323 = vrot.lane.b32.xlu0 %v1279_v54, %s1715_s28 }
 0x1b9   : > { %v1176_v41 = vrot.slane %v1112_v15, 1  ;;  %v1249_v53 = vrot.slane %v1112_v15, 2  ;;  %v1174_v40 = vrot.slane %v1111_v46, 1  ;;  %v1247_v57 = vrot.slane %v1111_v46, 2 }
 0x1ba   : > { %v1280_v48 = vadd.f32 %v1245_v21, %v1207_v39 }
 0x1bb   : > { %v1175_v30 = vsel %vm1137_vm2, %v1173_v27, %v1174_v40  ;;  %v1177_v36 = vsel %vm1137_vm2, %v1174_v40, %v1176_v41  ;;  %v1250_v34 = vsel %vm1210_vm3, %v1247_v57, %v1249_v53  ;;  %v1248_v28 = vsel %vm1210_vm3, %v1246_v49, %v1247_v57 }
 0x1bc   : > { %v1209_v24 = vadd.f32 %v1177_v36, %v1111_v46  ;;  %1325 = vrot.lane.b32.xlu1 %v1280_v48, %s1715_s28  ;;  %v1208_v12 = vadd.f32 %v1175_v30, %v1110_v43 }
 0x1be   : > { %v1282_v35 = vadd.f32 %v1250_v34, %v1209_v24  ;;  %v1281_v31 = vadd.f32 %v1248_v28, %v1208_v12 }
 0x1c0   : > { %1329 = vrot.lane.b32.xlu1 %v1282_v35, %s1715_s28  ;;  %1327 = vrot.lane.b32.xlu0 %v1281_v31, %s1715_s28 }
 0x1ca   : > { %v1300_v2 = vpop.permute.xlu0 %1299 }
 0x1cb   : > { %1348 = vst.msk [vmem:[%s2455_s3] sm:$0xff] %vm1347_vm4, %v1300_v2  ;;  %v1366_v11 = vsel %vm1347_vm4, %v1300_v2, 0.0 }
 0x1ce   : > { %v1302_v56 = vpop.permute.xlu1 %1301 }
 0x1cf   : > { %1349 = vst.msk [vmem:[%s2455_s3 + $0x8] sm:$0xff] %vm1347_vm4, %v1302_v56  ;;  %v1369_v59 = vsel %vm1347_vm4, %v1302_v56, 0.0 }
 0x1d2   : > { %v1306_v10 = vpop.permute.xlu1 %1305  ;;  %v1304_v38 = vpop.permute.xlu0 %1303 }
 0x1d3   : > { %1351 = vst.msk [vmem:[%s2455_s3 + $0x18] sm:$0xff] %vm1347_vm4, %v1306_v10  ;;  %1350 = vst.msk [vmem:[%s2455_s3 + $0x10] sm:$0xff] %vm1347_vm4, %v1304_v38  ;;  %v1372_v51 = vsel %vm1347_vm4, %v1304_v38, 0.0  ;;  %v1375_v61 = vsel %vm1347_vm4, %v1306_v10, 0.0 }
 0x1de   : > { %v1310_v25 = vpop.permute.xlu1 %1309  ;;  %v1308_v17 = vpop.permute.xlu0 %1307 }
 0x1df   : > { %1353 = vst.msk [vmem:[%s2455_s3 + $0x28] sm:$0xff] %vm1347_vm4, %v1310_v25  ;;  %1352 = vst.msk [vmem:[%s2455_s3 + $0x20] sm:$0xff] %vm1347_vm4, %v1308_v17  ;;  %v1378_v9 = vsel %vm1347_vm4, %v1308_v17, 0.0  ;;  %v1381_v62 = vsel %vm1347_vm4, %v1310_v25, 0.0 }
 0x1ee   : > { %v1312_v32 = vpop.permute.xlu0 %1311 }
 0x1ef   : > { %1354 = vst.msk [vmem:[%s2455_s3 + $0x30] sm:$0xff] %vm1347_vm4, %v1312_v32  ;;  %1364 = vst.msk [vmem:[%s2455_s3 + $0x80] sm:$0xff] %vm1347_vm4, %v1312_v32  ;;  %v1384_v18 = vsel %vm1347_vm4, %v1312_v32, 0.0 }
 0x1f0   : > { %1385 = vadd.xlane.f32.xlu1 %v1384_v18 }
 0x1f2   : > { %v1314_v44 = vpop.permute.xlu1 %1313 }
 0x1f3   : > { %1355 = vst.msk [vmem:[%s2455_s3 + $0x38] sm:$0xff] %vm1347_vm4, %v1314_v44  ;;  %1365 = vst.msk [vmem:[%s2455_s3 + $0x88] sm:$0xff] %vm1347_vm4, %v1314_v44  ;;  %v1387_v42 = vsel %vm1347_vm4, %v1314_v44, 0.0 }
 0x1f4   : > { %1388 = vadd.xlane.f32.xlu0 %v1387_v42  ;;  %1370 = vadd.xlane.f32.xlu1 %v1369_v59 }
 0x1f8   : > { %1367 = vadd.xlane.f32.xlu0 %v1366_v11  ;;  %1379 = vadd.xlane.f32.xlu1 %v1378_v9 }
 0x1fc   : > { %1373 = vadd.xlane.f32.xlu0 %v1372_v51 }
 0x200   : > { %1376 = vadd.xlane.f32.xlu0 %v1375_v61 }
 0x204   : > { %1382 = vadd.xlane.f32.xlu0 %v1381_v62 }
 0x206   : > { %v1316_v0 = vpop.permute.xlu0 %1315 }
 0x207   : > { %1356 = vst.msk [vmem:[%s2455_s3 + $0x40] sm:$0xff] %vm1347_vm4, %v1316_v0  ;;  %v1390_v55 = vsel %vm1347_vm4, %v1316_v0, 0.0 }
 0x208   : > { %1391 = vadd.xlane.f32.xlu1 %v1390_v55 }
 0x20a   : > { %v1318_v7 = vpop.permute.xlu1 %1317 }
 0x20b   : > { %1357 = vst.msk [vmem:[%s2455_s3 + $0x48] sm:$0xff] %vm1347_vm4, %v1318_v7  ;;  %v1393_v5 = vsel %vm1347_vm4, %v1318_v7, 0.0 }
 0x20c   : > { %1394 = vadd.xlane.f32.xlu0 %v1393_v5 }
 0x21e   : > { %v1320_v1 = vpop.permute.xlu0 %1319 }
 0x21f   : > { %1358 = vst.msk [vmem:[%s2455_s3 + $0x50] sm:$0xff] %vm1347_vm4, %v1320_v1  ;;  %v1396_v58 = vsel %vm1347_vm4, %v1320_v1, 0.0 }
 0x220   : > { %1397 = vadd.xlane.f32.xlu1 %v1396_v58 }
 0x222   : > { %v1322_v60 = vpop.permute.xlu1 %1321 }
 0x223   : > { %1359 = vst.msk [vmem:[%s2455_s3 + $0x58] sm:$0xff] %vm1347_vm4, %v1322_v60  ;;  %v1399_v3 = vsel %vm1347_vm4, %v1322_v60, 0.0 }
 0x224   : > { %1400 = vadd.xlane.f32.xlu0 %v1399_v3 }
 0x22a   : > { %v1324_v33 = vpop.permute.xlu0 %1323 }
 0x22b   : > { %1360 = vst.msk [vmem:[%s2455_s3 + $0x60] sm:$0xff] %vm1347_vm4, %v1324_v33  ;;  %v1402_v4 = vsel %vm1347_vm4, %v1324_v33, 0.0 }
 0x22c   : > { %1403 = vadd.xlane.f32.xlu1 %v1402_v4 }
 0x22e   : > { %v1326_v63 = vpop.permute.xlu1 %1325 }
 0x22f   : > { %1361 = vst.msk [vmem:[%s2455_s3 + $0x68] sm:$0xff] %vm1347_vm4, %v1326_v63  ;;  %v1405_v45 = vsel %vm1347_vm4, %v1326_v63, 0.0 }
 0x230   : > { %1406 = vadd.xlane.f32.xlu0 %v1405_v45 }
 0x232   : > { %v1330_v19 = vpop.permute.xlu1 %1329  ;;  %v1328_v6 = vpop.permute.xlu0 %1327 }
 0x233   : > { %1363 = vst.msk [vmem:[%s2455_s3 + $0x78] sm:$0xff] %vm1347_vm4, %v1330_v19  ;;  %1362 = vst.msk [vmem:[%s2455_s3 + $0x70] sm:$0xff] %vm1347_vm4, %v1328_v6  ;;  %v1411_v29 = vsel %vm1347_vm4, %v1330_v19, 0.0  ;;  %v1408_v20 = vsel %vm1347_vm4, %v1328_v6, 0.0 }
 0x234   : > { %1412 = vadd.xlane.f32.xlu0 %v1411_v29  ;;  %1409 = vadd.xlane.f32.xlu1 %v1408_v20 }
 0x235   : > { %1662 = shalt.err (!%p1659_p3)
}
 0x236   : > { %s1663_s23 = scalar_lea.hbm %s2514_s8, 2304  ;;  %s1667_s26 = scalar_lea.hbm %s2566_s1, 4608 }
 0x237   : > { %p1664_p4 = scmp.ne.s32.totalorder %s2514_s8, %s1663_s23  ;;  %p1668_p9 = scmp.lt.u32.totalorder %s2514_s8, %s2566_s1 }
 0x238   : > { %p1669_p10 = scmp.lt.u32.totalorder %s1667_s26, %s1663_s23  ;;  %p1671_p12 = scmp.lt.u32.totalorder %s1663_s23, %s2514_s8 }
 0x239   : > { %p1665_p7 = pnand %p1664_p4, %p1772_p5 }
 0x23a   : > { %p1670_p11 = por %p1669_p10, %p1668_p9 }
 0x23b   : > { %p1666_p8 = pneg %p1665_p7 }
 0x23c   : > { %p1672_p13 = por %p1671_p12, %p1670_p11 }
 0x23e   : > { %p1673_p0 = pnand %p1672_p13, %p1666_p8 }
 0x240   : > { %1676 = shalt.err (!%p1673_p0)
}
 0x241   : > { %s1717_s29 = smov 128   ;;  %s1718_s30 = smov 8   ;;  %vm1478_vm5 = vcmask 0  }
 0x242   : > { %1593 = dma.vmem_to_hbm [thread:$0]  (%p1772_p5), %s2516_s5, 2304, %s2514_s8, %s2520_s14, %s1717_s29, %s1717_s29, %s1718_s30  }
 0x243   : > { %s150_s4 = scalar_lea.vmem %s2567_s2, %s1784_s21 }
 0x27d   : > { %v1386_v23 = vpop.xlane.xlu1 %1385 }
 0x281   : > { %v1389_v13 = vpop.xlane.xlu0 %1388  ;;  %v1371_v37 = vpop.xlane.xlu1 %1370 }
 0x282   : > { %v1435_v27 = vadd.f32 %v1389_v13, %v1386_v23 }
 0x284   : > { %v1436_v57 = vrot.slane %v1435_v27, 4 }
 0x285   : > { %v1368_v26 = vpop.xlane.xlu0 %1367  ;;  %v1380_v47 = vpop.xlane.xlu1 %1379 }
 0x286   : > { %v1414_v54 = vadd.f32 %v1371_v37, %v1368_v26  ;;  %v1437_v35 = vadd.f32 %v1436_v57, %v1435_v27 }
 0x288   : > { %v1415_v15 = vrot.slane %v1414_v54, 4  ;;  %v1438_v25 = vrot.slane %v1437_v35, 2 }
 0x289   : > { %v1374_v52 = vpop.xlane.xlu0 %1373 }
 0x28a   : > { %v1416_v53 = vadd.f32 %v1415_v15, %v1414_v54  ;;  %v1439_v59 = vadd.f32 %v1438_v25, %v1437_v35 }
 0x28c   : > { %v1417_v12 = vrot.slane %v1416_v53, 2  ;;  %v1440_v1 = vrot.slane %v1439_v59, 1 }
 0x28d   : > { %v1377_v43 = vpop.xlane.xlu0 %1376 }
 0x28e   : > { %v1421_v50 = vadd.f32 %v1377_v43, %v1374_v52  ;;  %v1418_v56 = vadd.f32 %v1417_v12, %v1416_v53  ;;  %v1441_v20 = vadd.f32 %v1440_v1, %v1439_v59 }
 0x290   : > { %v1422_v16 = vrot.slane %v1421_v50, 4  ;;  %v1419_v18 = vrot.slane %v1418_v56, 1 }
 0x291   : > { %v1383_v22 = vpop.xlane.xlu0 %1382 }
 0x292   : > { %v1428_v14 = vadd.f32 %v1383_v22, %v1380_v47  ;;  %v1423_v21 = vadd.f32 %v1422_v16, %v1421_v50  ;;  %v1420_v0 = vadd.f32 %v1419_v18, %v1418_v56 }
 0x294   : > { %v1429_v46 = vrot.slane %v1428_v14, 4  ;;  %v1424_v30 = vrot.slane %v1423_v21, 2 }
 0x295   : > { %v1392_v39 = vpop.xlane.xlu1 %1391 }
 0x296   : > { %v1430_v40 = vadd.f32 %v1429_v46, %v1428_v14  ;;  %v1425_v31 = vadd.f32 %v1424_v30, %v1423_v21 }
 0x298   : > { %v1431_v34 = vrot.slane %v1430_v40, 2  ;;  %v1426_v17 = vrot.slane %v1425_v31, 1 }
 0x299   : > { %v1395_v8 = vpop.xlane.xlu0 %1394 }
 0x29a   : > { %v1442_v41 = vadd.f32 %v1395_v8, %v1392_v39  ;;  %v1432_v10 = vadd.f32 %v1431_v34, %v1430_v40  ;;  %v1427_v51 = vadd.f32 %v1426_v17, %v1425_v31 }
 0x29c   : > { %v1443_v36 = vrot.slane %v1442_v41, 4  ;;  %v1433_v44 = vrot.slane %v1432_v10, 1  ;;  %v1470_v3 = vadd.f32 %v1427_v51, %v1420_v0 }
 0x29e   : > { %v1444_v2 = vadd.f32 %v1443_v36, %v1442_v41  ;;  %v1434_v55 = vadd.f32 %v1433_v44, %v1432_v10 }
 0x2a0   : > { %v1445_v32 = vrot.slane %v1444_v2, 2  ;;  %v1471_v45 = vadd.f32 %v1470_v3, %v1434_v55 }
 0x2a2   : > { %v1446_v61 = vadd.f32 %v1445_v32, %v1444_v2  ;;  %v1472_v23 = vadd.f32 %v1471_v45, %v1441_v20 }
 0x2a4   : > { %v1447_v33 = vrot.slane %v1446_v61, 1 }
 0x2a6   : > { %v1448_v13 = vadd.f32 %v1447_v33, %v1446_v61 }
 0x2a8   : > { %v1473_v50 = vadd.f32 %v1472_v23, %v1448_v13 }
 0x2ad   : > { %v1398_v48 = vpop.xlane.xlu1 %1397 }
 0x2b1   : > { %v1401_v49 = vpop.xlane.xlu0 %1400 }
 0x2b2   : > { %v1449_v24 = vadd.f32 %v1401_v49, %v1398_v48 }
 0x2b4   : > { %v1450_v28 = vrot.slane %v1449_v24, 4 }
 0x2b6   : > { %v1451_v38 = vadd.f32 %v1450_v28, %v1449_v24 }
 0x2b8   : > { %v1452_v42 = vrot.slane %v1451_v38, 2 }
 0x2b9   : > { %v1404_v11 = vpop.xlane.xlu1 %1403 }
 0x2ba   : > { %v1453_v7 = vadd.f32 %v1452_v42, %v1451_v38 }
 0x2bc   : > { %v1454_v19 = vrot.slane %v1453_v7, 1 }
 0x2bd   : > { %v1407_v9 = vpop.xlane.xlu0 %1406 }
 0x2be   : > { %v1456_v62 = vadd.f32 %v1407_v9, %v1404_v11  ;;  %v1455_v43 = vadd.f32 %v1454_v19, %v1453_v7 }
 0x2c0   : > { %v1457_v5 = vrot.slane %v1456_v62, 4  ;;  %v1474_v14 = vadd.f32 %v1473_v50, %v1455_v43 }
 0x2c1   : > { %v1410_v58 = vpop.xlane.xlu1 %1409  ;;  %v1413_v60 = vpop.xlane.xlu0 %1412 }
 0x2c2   : > { %v1458_v4 = vadd.f32 %v1457_v5, %v1456_v62  ;;  %v1463_v63 = vadd.f32 %v1413_v60, %v1410_v58 }
 0x2c4   : > { %v1459_v6 = vrot.slane %v1458_v4, 2  ;;  %v1464_v29 = vrot.slane %v1463_v63, 4 }
 0x2c6   : > { %v1460_v26 = vadd.f32 %v1459_v6, %v1458_v4  ;;  %v1465_v52 = vadd.f32 %v1464_v29, %v1463_v63 }
 0x2c8   : > { %v1461_v37 = vrot.slane %v1460_v26, 1  ;;  %v1466_v22 = vrot.slane %v1465_v52, 2 }
 0x2ca   : > { %v1462_v47 = vadd.f32 %v1461_v37, %v1460_v26  ;;  %v1467_v54 = vadd.f32 %v1466_v22, %v1465_v52 }
 0x2cc   : > { %v1468_v16 = vrot.slane %v1467_v54, 1  ;;  %v1475_v8 = vadd.f32 %v1474_v14, %v1462_v47 }
 0x2ce   : > { %v1469_v15 = vadd.f32 %v1468_v16, %v1467_v54 }
 0x2d0   : > { %v1476_v46 = vadd.f32 %v1475_v8, %v1469_v15 }
 0x2d2   : > { %v1477_v27 = vadd.f32 %v1476_v46, %v1441_v20 }
 0x2d4   : > { %1479 = vst.msk [vmem:[%s150_s4] sm:$0x1] %vm1478_vm5, %v1477_v27 }
 0x2d5 PF: > { %p1599_p5 = scmp.ge.s32.totalorder %s1711_s12, 2  ;;  %s1515_s5 = sand.u32 1, %s1699_s9  }
 0x2d6   : > { %s1516_s6 = scalar_lea.sflag [#allocation3], %s1515_s5 }
 0x2d7   : > { %p1596_p1 = pnand %p1599_p5, %p1776_p6 }
 0x2d9   : > { %1694 = dma.done.wait (!%p1596_p1), %s1516_s6, 2304  }
 0x2da   : > { %1696 = vsyncadd (!%p1596_p1), %s1516_s6, 4294964992  ;;  %p13_p2 = scmp.ge.s32.totalorder %s1759_s15, 4   ;;  %s2570_s9 = smov %s1703_s10 }
 0x2db   : > { %s2571_s10 = smov %s1707_s11  ;;  %s2572_s11 = smov %s1770_s18 }
 0x2dc   : > { %s2573_s12 = smov %s1759_s15  ;;  %15 = sbr.rel (!%p13_p2) target bundleno = 3 (0x3), region = 71 }
 0x2e3   :  { %1527 = vsyncpa [#allocation3], 1 }
 0x2e4   :  { %1529 = vsyncpa [#allocation3 + $0x1], 1 }

</bundles_post_ra>
